<compile_context>
chip_gen: v5e
topology: v5e:2x2
jax: 0.10.0
libtpu: 0.0.40
codegen_flags: <defaults>
</compile_context>

<pallas_src>
import functools

import numpy as np

import jax
import jax.numpy as jnp
from jax import lax
from jax.experimental import pallas as pl
from jax.experimental.pallas import tpu as pltpu


# ----------------------------------------------------------------------------
# helpers
# ----------------------------------------------------------------------------
def _round_up(x, m):
    return (x + m - 1) // m * m


# ----------------------------------------------------------------------------
# fused 1x1 conv + BN + SiLU with multi-input "virtual concat"
#   out[b] = SiLU(scale * (sum_i W_i @ X_i[b]) + bias)
# Channels on sublanes, pixels on lanes -> lane-dense output stores.
# ----------------------------------------------------------------------------
def _make_conv1x1_kernel(n_branches):
    def kernel(*refs):
        x_refs = refs[:n_branches]
        w_refs = refs[n_branches:2 * n_branches]
        s_ref, b_ref, o_ref = refs[2 * n_branches:]
        acc = jnp.zeros(o_ref.shape[1:], jnp.float32)          # (Cout, N)
        for x_ref, w_ref in zip(x_refs, w_refs):
            acc = acc + jnp.dot(w_ref[...], x_ref[0],
                                preferred_element_type=jnp.float32)
        y = acc * s_ref[...] + b_ref[...]                       # folded BN
        o_ref[0] = (y * jax.nn.sigmoid(y)).astype(o_ref.dtype)  # SiLU
    return kernel


def conv1x1_bn_silu(xs, ws, scale, bias):
    """xs: list of (B, Ci, N) arrays (channel concat fused via summed partial
    matmuls).  ws: list of (Cout, Ci).  Returns (B, Cout, N)."""
    B, _, N = (int(d) for d in xs[0].shape)
    cout = int(ws[0].shape[0])
    n_br = len(xs)

    in_specs = [pl.BlockSpec((1, int(x.shape[1]), N), lambda b: (b, 0, 0))
                for x in xs]
    in_specs += [pl.BlockSpec((cout, int(w.shape[1])), lambda b: (0, 0))
                 for w in ws]
    in_specs += [pl.BlockSpec((cout, 1), lambda b: (0, 0)),
                 pl.BlockSpec((cout, 1), lambda b: (0, 0))]

    return pl.pallas_call(
        _make_conv1x1_kernel(n_br),
        out_shape=jax.ShapeDtypeStruct((B, cout, N), xs[0].dtype),
        grid=(B,),
        in_specs=in_specs,
        out_specs=pl.BlockSpec((1, cout, N), lambda b: (b, 0, 0)),
        compiler_params=pltpu.CompilerParams(
            dimension_semantics=("parallel",)),
    )(*xs, *[w.astype(jnp.float32) for w in ws],
      scale.reshape(cout, 1).astype(jnp.float32),
      bias.reshape(cout, 1).astype(jnp.float32))


# ----------------------------------------------------------------------------
# fused Bottleneck: conv3x3+BN+SiLU -> conv3x3+BN+SiLU (+ residual)
# ----------------------------------------------------------------------------
def _bottleneck_kernel(x_ref, w1_ref, s1_ref, b1_ref, w2_ref, s2_ref, b2_ref,
                       mask_ref, o_ref, *, Wp, Lt, Ly, shortcut):
    x = x_ref[0]                                    # (C, Lx) flat padded input

    # conv1 over the halo-extended t-domain (1-pixel halo for conv2's padding).
    # Every tap is a contiguous lane-slice of the flat padded input.
    c = o_ref.shape[1]
    acc1 = jnp.zeros((c, Lt), jnp.float32)
    for kh in range(3):
        for kw in range(3):
            d = kh * Wp + kw
            acc1 = acc1 + jnp.dot(w1_ref[kh, kw], x[:, d:d + Lt],
                                  preferred_element_type=jnp.float32)
    t = acc1 * s1_ref[...] + b1_ref[...]            # folded BN
    t = t * jax.nn.sigmoid(t)                       # SiLU
    t = t * mask_ref[...]                           # zero halo == conv2 zero-pad

    # conv2 producing the (wide) output strip.
    acc2 = jnp.zeros((c, Ly), jnp.float32)
    for kh in range(3):
        for kw in range(3):
            d = kh * Wp + kw
            acc2 = acc2 + jnp.dot(w2_ref[kh, kw], t[:, d:d + Ly],
                                  preferred_element_type=jnp.float32)
    y = acc2 * s2_ref[...] + b2_ref[...]
    y = y * jax.nn.sigmoid(y)                       # SiLU
    if shortcut:                                    # x + cv2(cv1(x))
        y = y + x[:, 2 * Wp + 2:2 * Wp + 2 + Ly]
    o_ref[0] = y.astype(o_ref.dtype)


def bottleneck_3x3_fused(x, w1_oihw, s1, b1, w2_oihw, s2, b2, *, shortcut):
    """One pallas_call for Bottleneck(c, c): cv2(cv1(x)) (+x), 'same' padding.
    x: (B, C, H, W)."""
    B, c, H, W = (int(d) for d in x.shape)
    Wp, Hp = W + 4, H + 4
    Ly = H * Wp                                     # wide output (junk cols W..W+3)
    Lt = _round_up((H + 2) * Wp + 2, 128)           # halo-extended t domain
    Lx = _round_up(max(Hp * Wp, 2 * Wp + 2 + Lt), 128)

    # spatially pad by 2 (covers conv1's padding AND conv2's halo), flatten,
    # then zero-pad the flat axis so all in-kernel tap slices stay in-bounds.
    xp = jnp.pad(x, ((0, 0), (0, 0), (2, 2), (2, 2))).reshape(B, c, Hp * Wp)
    xp = jnp.pad(xp, ((0, 0), (0, 0), (0, Lx - Hp * Wp)))

    # 0/1 mask over the t-domain: positions outside the valid HxW region act as
    # conv2's zero padding.  Built host-side (compile-time constant).
    q = np.arange(Lt)
    a, bcol = q // Wp, q % Wp
    valid = (a >= 1) & (a <= H) & (bcol >= 1) & (bcol <= W)
    mask = jnp.asarray(valid.astype(np.float32).reshape(1, Lt))

    w1 = jnp.transpose(w1_oihw, (2, 3, 0, 1)).astype(jnp.float32)  # (3,3,Co,Ci)
    w2 = jnp.transpose(w2_oihw, (2, 3, 0, 1)).astype(jnp.float32)

    kernel = functools.partial(_bottleneck_kernel, Wp=Wp, Lt=Lt, Ly=Ly,
                               shortcut=shortcut)
    y_wide = pl.pallas_call(
        kernel,
        out_shape=jax.ShapeDtypeStruct((B, c, Ly), x.dtype),
        grid=(B,),
        in_specs=[
            pl.BlockSpec((1, c, Lx), lambda i: (i, 0, 0)),
            pl.BlockSpec((3, 3, c, c), lambda i: (0, 0, 0, 0)),
            pl.BlockSpec((c, 1), lambda i: (0, 0)),
            pl.BlockSpec((c, 1), lambda i: (0, 0)),
            pl.BlockSpec((3, 3, c, c), lambda i: (0, 0, 0, 0)),
            pl.BlockSpec((c, 1), lambda i: (0, 0)),
            pl.BlockSpec((c, 1), lambda i: (0, 0)),
            pl.BlockSpec((1, Lt), lambda i: (0, 0)),
        ],
        out_specs=pl.BlockSpec((1, c, Ly), lambda i: (i, 0, 0)),
        compiler_params=pltpu.CompilerParams(
            dimension_semantics=("parallel",)),
    )(xp, w1,
      s1.reshape(c, 1).astype(jnp.float32), b1.reshape(c, 1).astype(jnp.float32),
      w2,
      s2.reshape(c, 1).astype(jnp.float32), b2.reshape(c, 1).astype(jnp.float32),
      mask)

    # drop the junk columns of the wide output (cheap XLA slice).
    return y_wide.reshape(B, c, H, Wp)[:, :, :, :W]


# ----------------------------------------------------------------------------
# parameter construction (deterministic synthetic; BN folded to scale/bias)
# ----------------------------------------------------------------------------
def make_conv_params(key, c_in, c_out, k):
    k1, k2, k3, k4, k5 = jax.random.split(key, 5)
    w = jax.random.normal(k1, (c_out, c_in, k, k), jnp.float32) * 0.1   # OIHW
    gamma = jax.random.uniform(k2, (c_out,), minval=0.5, maxval=1.5)
    beta = jax.random.normal(k3, (c_out,), jnp.float32) * 0.1
    mean = jax.random.normal(k4, (c_out,), jnp.float32) * 0.1
    var = jax.random.uniform(k5, (c_out,), minval=0.5, maxval=1.5)
    eps = 1e-5
    scale = gamma / jnp.sqrt(var + eps)
    bias = beta - mean * scale
    return {"w": w, "scale": scale, "bias": bias}


def make_c2f_params(key, c1, c2, n, e=0.5):
    c = int(c2 * e)
    keys = jax.random.split(key, 2 + 2 * n)
    params = {
        "cv1": make_conv_params(keys[0], c1, 2 * c, 1),
        "cv2": make_conv_params(keys[1], (2 + n) * c, c2, 1),
        "m": [],
    }
    for i in range(n):
        p1 = make_conv_params(keys[2 + 2 * i], c, c, 3)
        p2 = make_conv_params(keys[3 + 2 * i], c, c, 3)
        params["m"].append((p1, p2))
    return params


# ----------------------------------------------------------------------------
# C2f forward (Pallas)
# ----------------------------------------------------------------------------
def c2f_forward_pallas(x_nchw, params, n, shortcut):
    B, C1, H, W = (int(d) for d in x_nchw.shape)
    two_c = params["cv1"]["scale"].shape[0]       # static (shape-derived)
    c = two_c // 2
    C2 = params["cv2"]["scale"].shape[0]
    N = H * W

    x_flat = x_nchw.reshape(B, C1, N)

    # cv1 (1x1).  Output channels are [y0 | y1] == chunk(2, dim=C).
    w_cv1 = params["cv1"]["w"][:, :, 0, 0]                      # (2c, C1)
    y = conv1x1_bn_silu([x_flat], [w_cv1],
                        params["cv1"]["scale"], params["cv1"]["bias"])

    cur = y[:, c:, :].reshape(B, c, H, W)                       # y1
    branches = [y]                                              # [y0 | y1]
    branch_cs = [two_c]

    for i in range(n):                                          # fused Bottlenecks
        p1, p2 = params["m"][i]
        cur = bottleneck_3x3_fused(cur, p1["w"], p1["scale"], p1["bias"],
                                   p2["w"], p2["scale"], p2["bias"],
                                   shortcut=shortcut)
        branches.append(cur.reshape(B, c, N))
        branch_cs.append(c)

    # cv2 (1x1) with the channel concat fused into the kernel (per-branch
    # weight slices -> summed partial matmuls).
    w_cv2 = params["cv2"]["w"][:, :, 0, 0]                      # (C2, (2+n)c)
    w_splits, off = [], 0
    for ci in branch_cs:
        w_splits.append(w_cv2[:, off:off + ci])
        off += ci
    out = conv1x1_bn_silu(branches, w_splits,
                          params["cv2"]["scale"], params["cv2"]["bias"])
    return out.reshape(B, C2, H, W)


# ----------------------------------------------------------------------------
# pure-JAX reference (NCHW, mirrors the PyTorch module in eval mode)
# ----------------------------------------------------------------------------
def _ref_conv_bn_silu(x, p, k):
    pad = k // 2
    y = lax.conv_general_dilated(
        x, p["w"], window_strides=(1, 1), padding=[(pad, pad), (pad, pad)],
        dimension_numbers=("NCHW", "OIHW", "NCHW"),
        precision=lax.Precision.HIGHEST)
    y = y * p["scale"][None, :, None, None] + p["bias"][None, :, None, None]
    return y * jax.nn.sigmoid(y)


def c2f_forward_ref(x, params, n, shortcut):
    c = params["cv1"]["scale"].shape[0] // 2
    y = _ref_conv_bn_silu(x, params["cv1"], 1)
    y0, y1 = y[:, :c], y[:, c:]
    ys = [y0, y1]
    cur = y1
    for i in range(n):
        p1, p2 = params["m"][i]
        t = _ref_conv_bn_silu(cur, p1, 3)
        t = _ref_conv_bn_silu(t, p2, 3)
        cur = cur + t if shortcut else t
        ys.append(cur)
    return _ref_conv_bn_silu(jnp.concatenate(ys, axis=1), params["cv2"], 1)


# ----------------------------------------------------------------------------
if __name__ == "__main__":
    B, C1, C2, H, W = 2, 4, 8, 16, 16
    N_BOTTLENECK = 1
    SHORTCUT = True   # exercise the in-kernel residual-add path

    key = jax.random.PRNGKey(0)
    kx, kp = jax.random.split(key)
    x = jax.random.normal(kx, (B, C1, H, W), jnp.float32)
    params = make_c2f_params(kp, C1, C2, N_BOTTLENECK)

    fwd = functools.partial(c2f_forward_pallas, n=N_BOTTLENECK,
                            shortcut=SHORTCUT)
    out = jax.block_until_ready(jax.jit(fwd)(x, params))

    ref = jax.block_until_ready(
        c2f_forward_ref(x, params, N_BOTTLENECK, SHORTCUT))

    assert out.shape == (B, C2, H, W), out.shape
    err = float(jnp.max(jnp.abs(out - ref)))
    assert jnp.allclose(out, ref, atol=2e-2, rtol=2e-2), err
    print("KERNEL_OK")
</pallas_src>

<mosaic_0001>
module attributes {stable_mosaic.version = 11 : i64} {
  func.func @kernel(%arg0: i32, %arg1: memref<1x4x256xf32, #tpu.memory_space<vmem>>, %arg2: memref<8x4xf32, #tpu.memory_space<vmem>>, %arg3: memref<8x1xf32, #tpu.memory_space<vmem>>, %arg4: memref<8x1xf32, #tpu.memory_space<vmem>>, %arg5: memref<1x8x256xf32, #tpu.memory_space<vmem>>) attributes {dimension_semantics = [#tpu.dimension_semantics<parallel>], iteration_bounds = array<i64: 2>, scalar_prefetch = 0 : i64, scratch_operands = 0 : i64, tpu.core_type = #tpu.core_type<tc>, window_params = [{transform_indices = @transform_0, window_bounds = array<i64: 1, 4, 256>}, {pipeline_mode = #tpu.pipeline_mode<synchronous>, transform_indices = @transform_1, window_bounds = array<i64: 8, 4>}, {pipeline_mode = #tpu.pipeline_mode<synchronous>, transform_indices = @transform_2, window_bounds = array<i64: 8, 1>}, {pipeline_mode = #tpu.pipeline_mode<synchronous>, transform_indices = @transform_3, window_bounds = array<i64: 8, 1>}, {transform_indices = @transform_4, window_bounds = array<i64: 1, 8, 256>}]} {
    %cst = arith.constant 0.000000e+00 : f32
    %0 = vector.broadcast %cst : f32 to vector<8x256xf32>
    %c0 = arith.constant 0 : index
    %c0_0 = arith.constant 0 : index
    %1 = vector.load %arg2[%c0, %c0_0] : memref<8x4xf32, #tpu.memory_space<vmem>>, vector<8x4xf32>
    %c0_1 = arith.constant 0 : index
    %c0_2 = arith.constant 0 : index
    %c0_3 = arith.constant 0 : index
    %2 = vector.load %arg1[%c0_1, %c0_2, %c0_3] : memref<1x4x256xf32, #tpu.memory_space<vmem>>, vector<1x4x256xf32>
    %3 = vector.shape_cast %2 : vector<1x4x256xf32> to vector<4x256xf32>
    %cst_4 = arith.constant dense<0.000000e+00> : vector<8x256xf32>
    %4 = tpu.matmul %1, %3, %cst_4 {dimension_numbers = #tpu.dot_dimension_numbers<[1], [0], [0], [1], [0, 0, 1, 1], [], []>} : vector<8x4xf32>, vector<4x256xf32>, vector<8x256xf32> -> vector<8x256xf32>
    %5 = arith.addf %0, %4 : vector<8x256xf32>
    %c0_5 = arith.constant 0 : index
    %c0_6 = arith.constant 0 : index
    %6 = vector.load %arg3[%c0_5, %c0_6] : memref<8x1xf32, #tpu.memory_space<vmem>>, vector<8x1xf32>
    %7 = vector.broadcast %6 : vector<8x1xf32> to vector<8x256xf32>
    %8 = arith.mulf %5, %7 : vector<8x256xf32>
    %c0_7 = arith.constant 0 : index
    %c0_8 = arith.constant 0 : index
    %9 = vector.load %arg4[%c0_7, %c0_8] : memref<8x1xf32, #tpu.memory_space<vmem>>, vector<8x1xf32>
    %10 = vector.broadcast %9 : vector<8x1xf32> to vector<8x256xf32>
    %11 = arith.addf %8, %10 : vector<8x256xf32>
    %12 = arith.negf %11 : vector<8x256xf32>
    %13 = math.exp %12 : vector<8x256xf32>
    %cst_9 = arith.constant 1.000000e+00 : f32
    %14 = vector.broadcast %cst_9 : f32 to vector<8x256xf32>
    %15 = arith.addf %14, %13 : vector<8x256xf32>
    %16 = arith.divf %14, %15 : vector<8x256xf32>
    %17 = arith.mulf %11, %16 : vector<8x256xf32>
    %c0_10 = arith.constant 0 : index
    %c0_11 = arith.constant 0 : index
    %c0_12 = arith.constant 0 : index
    %18 = vector.load %arg5[%c0_10, %c0_11, %c0_12] : memref<1x8x256xf32, #tpu.memory_space<vmem>>, vector<1x8x256xf32>
    %19 = vector.shape_cast %18 : vector<1x8x256xf32> to vector<8x256xf32>
    %20 = vector.shape_cast %17 : vector<8x256xf32> to vector<1x8x256xf32>
    tpu.vector_store %arg5[%c0_10, %c0_11, %c0_12], %20 {strides = array<i32>} : memref<1x8x256xf32, #tpu.memory_space<vmem>>, vector<1x8x256xf32>,
    return
  }
  func.func @transform_0(%arg0: i32) -> (i32, i32, i32) {
    %c0_i32 = arith.constant 0 : i32
    %c0_i32_0 = arith.constant 0 : i32
    %c0_i32_1 = arith.constant 0 : i32
    return %arg0, %c0_i32, %c0_i32_0 : i32, i32, i32
  }
  func.func @transform_1(%arg0: i32) -> (i32, i32) {
    %c0_i32 = arith.constant 0 : i32
    %c0_i32_0 = arith.constant 0 : i32
    %c0_i32_1 = arith.constant 0 : i32
    return %c0_i32, %c0_i32_0 : i32, i32
  }
  func.func @transform_2(%arg0: i32) -> (i32, i32) {
    %c0_i32 = arith.constant 0 : i32
    %c0_i32_0 = arith.constant 0 : i32
    %c0_i32_1 = arith.constant 0 : i32
    return %c0_i32, %c0_i32_0 : i32, i32
  }
  func.func @transform_3(%arg0: i32) -> (i32, i32) {
    %c0_i32 = arith.constant 0 : i32
    %c0_i32_0 = arith.constant 0 : i32
    %c0_i32_1 = arith.constant 0 : i32
    return %c0_i32, %c0_i32_0 : i32, i32
  }
  func.func @transform_4(%arg0: i32) -> (i32, i32, i32) {
    %c0_i32 = arith.constant 0 : i32
    %c0_i32_0 = arith.constant 0 : i32
    %c0_i32_1 = arith.constant 0 : i32
    return %arg0, %c0_i32, %c0_i32_0 : i32, i32, i32
  }
}

module attributes {stable_mosaic.version = 11 : i64} {
  func.func @_bottleneck_kernel(%arg0: i32, %arg1: memref<1x4x512xf32, #tpu.memory_space<vmem>>, %arg2: memref<3x3x4x4xf32, #tpu.memory_space<vmem>>, %arg3: memref<4x1xf32, #tpu.memory_space<vmem>>, %arg4: memref<4x1xf32, #tpu.memory_space<vmem>>, %arg5: memref<3x3x4x4xf32, #tpu.memory_space<vmem>>, %arg6: memref<4x1xf32, #tpu.memory_space<vmem>>, %arg7: memref<4x1xf32, #tpu.memory_space<vmem>>, %arg8: memref<1x384xf32, #tpu.memory_space<vmem>>, %arg9: memref<1x4x320xf32, #tpu.memory_space<vmem>>) attributes {dimension_semantics = [#tpu.dimension_semantics<parallel>], iteration_bounds = array<i64: 2>, scalar_prefetch = 0 : i64, scratch_operands = 0 : i64, tpu.core_type = #tpu.core_type<tc>, window_params = [{transform_indices = @transform_0, window_bounds = array<i64: 1, 4, 512>}, {pipeline_mode = #tpu.pipeline_mode<synchronous>, transform_indices = @transform_1, window_bounds = array<i64: 3, 3, 4, 4>}, {pipeline_mode = #tpu.pipeline_mode<synchronous>, transform_indices = @transform_2, window_bounds = array<i64: 4, 1>}, {pipeline_mode = #tpu.pipeline_mode<synchronous>, transform_indices = @transform_3, window_bounds = array<i64: 4, 1>}, {pipeline_mode = #tpu.pipeline_mode<synchronous>, transform_indices = @transform_4, window_bounds = array<i64: 3, 3, 4, 4>}, {pipeline_mode = #tpu.pipeline_mode<synchronous>, transform_indices = @transform_5, window_bounds = array<i64: 4, 1>}, {pipeline_mode = #tpu.pipeline_mode<synchronous>, transform_indices = @transform_6, window_bounds = array<i64: 4, 1>}, {pipeline_mode = #tpu.pipeline_mode<synchronous>, transform_indices = @transform_7, window_bounds = array<i64: 1, 384>}, {transform_indices = @transform_8, window_bounds = array<i64: 1, 4, 320>}]} {
    %c0 = arith.constant 0 : index
    %c0_0 = arith.constant 0 : index
    %c0_1 = arith.constant 0 : index
    %0 = vector.load %arg1[%c0, %c0_0, %c0_1] : memref<1x4x512xf32, #tpu.memory_space<vmem>>, vector<1x4x512xf32>
    %1 = vector.shape_cast %0 : vector<1x4x512xf32> to vector<4x512xf32>
    %cst = arith.constant 0.000000e+00 : f32
    %2 = vector.broadcast %cst : f32 to vector<4x384xf32>
    %c0_2 = arith.constant 0 : index
    %c0_3 = arith.constant 0 : index
    %c0_4 = arith.constant 0 : index
    %c0_5 = arith.constant 0 : index
    %3 = vector.load %arg2[%c0_2, %c0_3, %c0_4, %c0_5] : memref<3x3x4x4xf32, #tpu.memory_space<vmem>>, vector<1x1x4x4xf32>
    %4 = vector.shape_cast %3 : vector<1x1x4x4xf32> to vector<4x4xf32>
    %5 = vector.extract_strided_slice %1 {offsets = [0, 0], sizes = [4, 384], strides = [1, 1]} : vector<4x512xf32> to vector<4x384xf32>
    %cst_6 = arith.constant dense<0.000000e+00> : vector<4x384xf32>
    %6 = tpu.matmul %4, %5, %cst_6 {dimension_numbers = #tpu.dot_dimension_numbers<[1], [0], [0], [1], [0, 0, 1, 1], [], []>} : vector<4x4xf32>, vector<4x384xf32>, vector<4x384xf32> -> vector<4x384xf32>
    %7 = arith.addf %2, %6 : vector<4x384xf32>
    %c0_7 = arith.constant 0 : index
    %c1 = arith.constant 1 : index
    %c0_8 = arith.constant 0 : index
    %c0_9 = arith.constant 0 : index
    %8 = vector.load %arg2[%c0_7, %c1, %c0_8, %c0_9] : memref<3x3x4x4xf32, #tpu.memory_space<vmem>>, vector<1x1x4x4xf32>
    %9 = vector.shape_cast %8 : vector<1x1x4x4xf32> to vector<4x4xf32>
    %10 = vector.extract_strided_slice %1 {offsets = [0, 1], sizes = [4, 384], strides = [1, 1]} : vector<4x512xf32> to vector<4x384xf32>
    %cst_10 = arith.constant dense<0.000000e+00> : vector<4x384xf32>
    %11 = tpu.matmul %9, %10, %cst_10 {dimension_numbers = #tpu.dot_dimension_numbers<[1], [0], [0], [1], [0, 0, 1, 1], [], []>} : vector<4x4xf32>, vector<4x384xf32>, vector<4x384xf32> -> vector<4x384xf32>
    %12 = arith.addf %7, %11 : vector<4x384xf32>
    %c0_11 = arith.constant 0 : index
    %c2 = arith.constant 2 : index
    %c0_12 = arith.constant 0 : index
    %c0_13 = arith.constant 0 : index
    %13 = vector.load %arg2[%c0_11, %c2, %c0_12, %c0_13] : memref<3x3x4x4xf32, #tpu.memory_space<vmem>>, vector<1x1x4x4xf32>
    %14 = vector.shape_cast %13 : vector<1x1x4x4xf32> to vector<4x4xf32>
    %15 = vector.extract_strided_slice %1 {offsets = [0, 2], sizes = [4, 384], strides = [1, 1]} : vector<4x512xf32> to vector<4x384xf32>
    %cst_14 = arith.constant dense<0.000000e+00> : vector<4x384xf32>
    %16 = tpu.matmul %14, %15, %cst_14 {dimension_numbers = #tpu.dot_dimension_numbers<[1], [0], [0], [1], [0, 0, 1, 1], [], []>} : vector<4x4xf32>, vector<4x384xf32>, vector<4x384xf32> -> vector<4x384xf32>
    %17 = arith.addf %12, %16 : vector<4x384xf32>
    %c1_15 = arith.constant 1 : index
    %c0_16 = arith.constant 0 : index
    %c0_17 = arith.constant 0 : index
    %c0_18 = arith.constant 0 : index
    %18 = vector.load %arg2[%c1_15, %c0_16, %c0_17, %c0_18] : memref<3x3x4x4xf32, #tpu.memory_space<vmem>>, vector<1x1x4x4xf32>
    %19 = vector.shape_cast %18 : vector<1x1x4x4xf32> to vector<4x4xf32>
    %20 = vector.extract_strided_slice %1 {offsets = [0, 20], sizes = [4, 384], strides = [1, 1]} : vector<4x512xf32> to vector<4x384xf32>
    %cst_19 = arith.constant dense<0.000000e+00> : vector<4x384xf32>
    %21 = tpu.matmul %19, %20, %cst_19 {dimension_numbers = #tpu.dot_dimension_numbers<[1], [0], [0], [1], [0, 0, 1, 1], [], []>} : vector<4x4xf32>, vector<4x384xf32>, vector<4x384xf32> -> vector<4x384xf32>
    %22 = arith.addf %17, %21 : vector<4x384xf32>
    %c1_20 = arith.constant 1 : index
    %c1_21 = arith.constant 1 : index
    %c0_22 = arith.constant 0 : index
    %c0_23 = arith.constant 0 : index
    %23 = vector.load %arg2[%c1_20, %c1_21, %c0_22, %c0_23] : memref<3x3x4x4xf32, #tpu.memory_space<vmem>>, vector<1x1x4x4xf32>
    %24 = vector.shape_cast %23 : vector<1x1x4x4xf32> to vector<4x4xf32>
    %25 = vector.extract_strided_slice %1 {offsets = [0, 21], sizes = [4, 384], strides = [1, 1]} : vector<4x512xf32> to vector<4x384xf32>
    %cst_24 = arith.constant dense<0.000000e+00> : vector<4x384xf32>
    %26 = tpu.matmul %24, %25, %cst_24 {dimension_numbers = #tpu.dot_dimension_numbers<[1], [0], [0], [1], [0, 0, 1, 1], [], []>} : vector<4x4xf32>, vector<4x384xf32>, vector<4x384xf32> -> vector<4x384xf32>
    %27 = arith.addf %22, %26 : vector<4x384xf32>
    %c1_25 = arith.constant 1 : index
    %c2_26 = arith.constant 2 : index
    %c0_27 = arith.constant 0 : index
    %c0_28 = arith.constant 0 : index
    %28 = vector.load %arg2[%c1_25, %c2_26, %c0_27, %c0_28] : memref<3x3x4x4xf32, #tpu.memory_space<vmem>>, vector<1x1x4x4xf32>
    %29 = vector.shape_cast %28 : vector<1x1x4x4xf32> to vector<4x4xf32>
    %30 = vector.extract_strided_slice %1 {offsets = [0, 22], sizes = [4, 384], strides = [1, 1]} : vector<4x512xf32> to vector<4x384xf32>
    %cst_29 = arith.constant dense<0.000000e+00> : vector<4x384xf32>
    %31 = tpu.matmul %29, %30, %cst_29 {dimension_numbers = #tpu.dot_dimension_numbers<[1], [0], [0], [1], [0, 0, 1, 1], [], []>} : vector<4x4xf32>, vector<4x384xf32>, vector<4x384xf32> -> vector<4x384xf32>
    %32 = arith.addf %27, %31 : vector<4x384xf32>
    %c2_30 = arith.constant 2 : index
    %c0_31 = arith.constant 0 : index
    %c0_32 = arith.constant 0 : index
    %c0_33 = arith.constant 0 : index
    %33 = vector.load %arg2[%c2_30, %c0_31, %c0_32, %c0_33] : memref<3x3x4x4xf32, #tpu.memory_space<vmem>>, vector<1x1x4x4xf32>
    %34 = vector.shape_cast %33 : vector<1x1x4x4xf32> to vector<4x4xf32>
    %35 = vector.extract_strided_slice %1 {offsets = [0, 40], sizes = [4, 384], strides = [1, 1]} : vector<4x512xf32> to vector<4x384xf32>
    %cst_34 = arith.constant dense<0.000000e+00> : vector<4x384xf32>
    %36 = tpu.matmul %34, %35, %cst_34 {dimension_numbers = #tpu.dot_dimension_numbers<[1], [0], [0], [1], [0, 0, 1, 1], [], []>} : vector<4x4xf32>, vector<4x384xf32>, vector<4x384xf32> -> vector<4x384xf32>
    %37 = arith.addf %32, %36 : vector<4x384xf32>
    %c2_35 = arith.constant 2 : index
    %c1_36 = arith.constant 1 : index
    %c0_37 = arith.constant 0 : index
    %c0_38 = arith.constant 0 : index
    %38 = vector.load %arg2[%c2_35, %c1_36, %c0_37, %c0_38] : memref<3x3x4x4xf32, #tpu.memory_space<vmem>>, vector<1x1x4x4xf32>
    %39 = vector.shape_cast %38 : vector<1x1x4x4xf32> to vector<4x4xf32>
    %40 = vector.extract_strided_slice %1 {offsets = [0, 41], sizes = [4, 384], strides = [1, 1]} : vector<4x512xf32> to vector<4x384xf32>
    %cst_39 = arith.constant dense<0.000000e+00> : vector<4x384xf32>
    %41 = tpu.matmul %39, %40, %cst_39 {dimension_numbers = #tpu.dot_dimension_numbers<[1], [0], [0], [1], [0, 0, 1, 1], [], []>} : vector<4x4xf32>, vector<4x384xf32>, vector<4x384xf32> -> vector<4x384xf32>
    %42 = arith.addf %37, %41 : vector<4x384xf32>
    %c2_40 = arith.constant 2 : index
    %c2_41 = arith.constant 2 : index
    %c0_42 = arith.constant 0 : index
    %c0_43 = arith.constant 0 : index
    %43 = vector.load %arg2[%c2_40, %c2_41, %c0_42, %c0_43] : memref<3x3x4x4xf32, #tpu.memory_space<vmem>>, vector<1x1x4x4xf32>
    %44 = vector.shape_cast %43 : vector<1x1x4x4xf32> to vector<4x4xf32>
    %45 = vector.extract_strided_slice %1 {offsets = [0, 42], sizes = [4, 384], strides = [1, 1]} : vector<4x512xf32> to vector<4x384xf32>
    %cst_44 = arith.constant dense<0.000000e+00> : vector<4x384xf32>
    %46 = tpu.matmul %44, %45, %cst_44 {dimension_numbers = #tpu.dot_dimension_numbers<[1], [0], [0], [1], [0, 0, 1, 1], [], []>} : vector<4x4xf32>, vector<4x384xf32>, vector<4x384xf32> -> vector<4x384xf32>
    %47 = arith.addf %42, %46 : vector<4x384xf32>
    %c0_45 = arith.constant 0 : index
    %c0_46 = arith.constant 0 : index
    %48 = vector.load %arg3[%c0_45, %c0_46] : memref<4x1xf32, #tpu.memory_space<vmem>>, vector<4x1xf32>
    %49 = vector.broadcast %48 : vector<4x1xf32> to vector<4x384xf32>
    %50 = arith.mulf %47, %49 : vector<4x384xf32>
    %c0_47 = arith.constant 0 : index
    %c0_48 = arith.constant 0 : index
    %51 = vector.load %arg4[%c0_47, %c0_48] : memref<4x1xf32, #tpu.memory_space<vmem>>, vector<4x1xf32>
    %52 = vector.broadcast %51 : vector<4x1xf32> to vector<4x384xf32>
    %53 = arith.addf %50, %52 : vector<4x384xf32>
    %54 = arith.negf %53 : vector<4x384xf32>
    %55 = math.exp %54 : vector<4x384xf32>
    %cst_49 = arith.constant 1.000000e+00 : f32
    %56 = vector.broadcast %cst_49 : f32 to vector<4x384xf32>
    %57 = arith.addf %56, %55 : vector<4x384xf32>
    %58 = arith.divf %56, %57 : vector<4x384xf32>
    %59 = arith.mulf %53, %58 : vector<4x384xf32>
    %c0_50 = arith.constant 0 : index
    %c0_51 = arith.constant 0 : index
    %60 = vector.load %arg8[%c0_50, %c0_51] : memref<1x384xf32, #tpu.memory_space<vmem>>, vector<1x384xf32>
    %61 = vector.broadcast %60 : vector<1x384xf32> to vector<4x384xf32>
    %62 = arith.mulf %59, %61 : vector<4x384xf32>
    %cst_52 = arith.constant 0.000000e+00 : f32
    %63 = vector.broadcast %cst_52 : f32 to vector<4x320xf32>
    %c0_53 = arith.constant 0 : index
    %c0_54 = arith.constant 0 : index
    %c0_55 = arith.constant 0 : index
    %c0_56 = arith.constant 0 : index
    %64 = vector.load %arg5[%c0_53, %c0_54, %c0_55, %c0_56] : memref<3x3x4x4xf32, #tpu.memory_space<vmem>>, vector<1x1x4x4xf32>
    %65 = vector.shape_cast %64 : vector<1x1x4x4xf32> to vector<4x4xf32>
    %66 = vector.extract_strided_slice %62 {offsets = [0, 0], sizes = [4, 320], strides = [1, 1]} : vector<4x384xf32> to vector<4x320xf32>
    %cst_57 = arith.constant dense<0.000000e+00> : vector<4x320xf32>
    %67 = tpu.matmul %65, %66, %cst_57 {dimension_numbers = #tpu.dot_dimension_numbers<[1], [0], [0], [1], [0, 0, 1, 1], [], []>} : vector<4x4xf32>, vector<4x320xf32>, vector<4x320xf32> -> vector<4x320xf32>
    %68 = arith.addf %63, %67 : vector<4x320xf32>
    %c0_58 = arith.constant 0 : index
    %c1_59 = arith.constant 1 : index
    %c0_60 = arith.constant 0 : index
    %c0_61 = arith.constant 0 : index
    %69 = vector.load %arg5[%c0_58, %c1_59, %c0_60, %c0_61] : memref<3x3x4x4xf32, #tpu.memory_space<vmem>>, vector<1x1x4x4xf32>
    %70 = vector.shape_cast %69 : vector<1x1x4x4xf32> to vector<4x4xf32>
    %71 = vector.extract_strided_slice %62 {offsets = [0, 1], sizes = [4, 320], strides = [1, 1]} : vector<4x384xf32> to vector<4x320xf32>
    %cst_62 = arith.constant dense<0.000000e+00> : vector<4x320xf32>
    %72 = tpu.matmul %70, %71, %cst_62 {dimension_numbers = #tpu.dot_dimension_numbers<[1], [0], [0], [1], [0, 0, 1, 1], [], []>} : vector<4x4xf32>, vector<4x320xf32>, vector<4x320xf32> -> vector<4x320xf32>
    %73 = arith.addf %68, %72 : vector<4x320xf32>
    %c0_63 = arith.constant 0 : index
    %c2_64 = arith.constant 2 : index
    %c0_65 = arith.constant 0 : index
    %c0_66 = arith.constant 0 : index
    %74 = vector.load %arg5[%c0_63, %c2_64, %c0_65, %c0_66] : memref<3x3x4x4xf32, #tpu.memory_space<vmem>>, vector<1x1x4x4xf32>
    %75 = vector.shape_cast %74 : vector<1x1x4x4xf32> to vector<4x4xf32>
    %76 = vector.extract_strided_slice %62 {offsets = [0, 2], sizes = [4, 320], strides = [1, 1]} : vector<4x384xf32> to vector<4x320xf32>
    %cst_67 = arith.constant dense<0.000000e+00> : vector<4x320xf32>
    %77 = tpu.matmul %75, %76, %cst_67 {dimension_numbers = #tpu.dot_dimension_numbers<[1], [0], [0], [1], [0, 0, 1, 1], [], []>} : vector<4x4xf32>, vector<4x320xf32>, vector<4x320xf32> -> vector<4x320xf32>
    %78 = arith.addf %73, %77 : vector<4x320xf32>
    %c1_68 = arith.constant 1 : index
    %c0_69 = arith.constant 0 : index
    %c0_70 = arith.constant 0 : index
    %c0_71 = arith.constant 0 : index
    %79 = vector.load %arg5[%c1_68, %c0_69, %c0_70, %c0_71] : memref<3x3x4x4xf32, #tpu.memory_space<vmem>>, vector<1x1x4x4xf32>
    %80 = vector.shape_cast %79 : vector<1x1x4x4xf32> to vector<4x4xf32>
    %81 = vector.extract_strided_slice %62 {offsets = [0, 20], sizes = [4, 320], strides = [1, 1]} : vector<4x384xf32> to vector<4x320xf32>
    %cst_72 = arith.constant dense<0.000000e+00> : vector<4x320xf32>
    %82 = tpu.matmul %80, %81, %cst_72 {dimension_numbers = #tpu.dot_dimension_numbers<[1], [0], [0], [1], [0, 0, 1, 1], [], []>} : vector<4x4xf32>, vector<4x320xf32>, vector<4x320xf32> -> vector<4x320xf32>
    %83 = arith.addf %78, %82 : vector<4x320xf32>
    %c1_73 = arith.constant 1 : index
    %c1_74 = arith.constant 1 : index
    %c0_75 = arith.constant 0 : index
    %c0_76 = arith.constant 0 : index
    %84 = vector.load %arg5[%c1_73, %c1_74, %c0_75, %c0_76] : memref<3x3x4x4xf32, #tpu.memory_space<vmem>>, vector<1x1x4x4xf32>
    %85 = vector.shape_cast %84 : vector<1x1x4x4xf32> to vector<4x4xf32>
    %86 = vector.extract_strided_slice %62 {offsets = [0, 21], sizes = [4, 320], strides = [1, 1]} : vector<4x384xf32> to vector<4x320xf32>
    %cst_77 = arith.constant dense<0.000000e+00> : vector<4x320xf32>
    %87 = tpu.matmul %85, %86, %cst_77 {dimension_numbers = #tpu.dot_dimension_numbers<[1], [0], [0], [1], [0, 0, 1, 1], [], []>} : vector<4x4xf32>, vector<4x320xf32>, vector<4x320xf32> -> vector<4x320xf32>
    %88 = arith.addf %83, %87 : vector<4x320xf32>
    %c1_78 = arith.constant 1 : index
    %c2_79 = arith.constant 2 : index
    %c0_80 = arith.constant 0 : index
    %c0_81 = arith.constant 0 : index
    %89 = vector.load %arg5[%c1_78, %c2_79, %c0_80, %c0_81] : memref<3x3x4x4xf32, #tpu.memory_space<vmem>>, vector<1x1x4x4xf32>
    %90 = vector.shape_cast %89 : vector<1x1x4x4xf32> to vector<4x4xf32>
    %91 = vector.extract_strided_slice %62 {offsets = [0, 22], sizes = [4, 320], strides = [1, 1]} : vector<4x384xf32> to vector<4x320xf32>
    %cst_82 = arith.constant dense<0.000000e+00> : vector<4x320xf32>
    %92 = tpu.matmul %90, %91, %cst_82 {dimension_numbers = #tpu.dot_dimension_numbers<[1], [0], [0], [1], [0, 0, 1, 1], [], []>} : vector<4x4xf32>, vector<4x320xf32>, vector<4x320xf32> -> vector<4x320xf32>
    %93 = arith.addf %88, %92 : vector<4x320xf32>
    %c2_83 = arith.constant 2 : index
    %c0_84 = arith.constant 0 : index
    %c0_85 = arith.constant 0 : index
    %c0_86 = arith.constant 0 : index
    %94 = vector.load %arg5[%c2_83, %c0_84, %c0_85, %c0_86] : memref<3x3x4x4xf32, #tpu.memory_space<vmem>>, vector<1x1x4x4xf32>
    %95 = vector.shape_cast %94 : vector<1x1x4x4xf32> to vector<4x4xf32>
    %96 = vector.extract_strided_slice %62 {offsets = [0, 40], sizes = [4, 320], strides = [1, 1]} : vector<4x384xf32> to vector<4x320xf32>
    %cst_87 = arith.constant dense<0.000000e+00> : vector<4x320xf32>
    %97 = tpu.matmul %95, %96, %cst_87 {dimension_numbers = #tpu.dot_dimension_numbers<[1], [0], [0], [1], [0, 0, 1, 1], [], []>} : vector<4x4xf32>, vector<4x320xf32>, vector<4x320xf32> -> vector<4x320xf32>
    %98 = arith.addf %93, %97 : vector<4x320xf32>
    %c2_88 = arith.constant 2 : index
    %c1_89 = arith.constant 1 : index
    %c0_90 = arith.constant 0 : index
    %c0_91 = arith.constant 0 : index
    %99 = vector.load %arg5[%c2_88, %c1_89, %c0_90, %c0_91] : memref<3x3x4x4xf32, #tpu.memory_space<vmem>>, vector<1x1x4x4xf32>
    %100 = vector.shape_cast %99 : vector<1x1x4x4xf32> to vector<4x4xf32>
    %101 = vector.extract_strided_slice %62 {offsets = [0, 41], sizes = [4, 320], strides = [1, 1]} : vector<4x384xf32> to vector<4x320xf32>
    %cst_92 = arith.constant dense<0.000000e+00> : vector<4x320xf32>
    %102 = tpu.matmul %100, %101, %cst_92 {dimension_numbers = #tpu.dot_dimension_numbers<[1], [0], [0], [1], [0, 0, 1, 1], [], []>} : vector<4x4xf32>, vector<4x320xf32>, vector<4x320xf32> -> vector<4x320xf32>
    %103 = arith.addf %98, %102 : vector<4x320xf32>
    %c2_93 = arith.constant 2 : index
    %c2_94 = arith.constant 2 : index
    %c0_95 = arith.constant 0 : index
    %c0_96 = arith.constant 0 : index
    %104 = vector.load %arg5[%c2_93, %c2_94, %c0_95, %c0_96] : memref<3x3x4x4xf32, #tpu.memory_space<vmem>>, vector<1x1x4x4xf32>
    %105 = vector.shape_cast %104 : vector<1x1x4x4xf32> to vector<4x4xf32>
    %106 = vector.extract_strided_slice %62 {offsets = [0, 42], sizes = [4, 320], strides = [1, 1]} : vector<4x384xf32> to vector<4x320xf32>
    %cst_97 = arith.constant dense<0.000000e+00> : vector<4x320xf32>
    %107 = tpu.matmul %105, %106, %cst_97 {dimension_numbers = #tpu.dot_dimension_numbers<[1], [0], [0], [1], [0, 0, 1, 1], [], []>} : vector<4x4xf32>, vector<4x320xf32>, vector<4x320xf32> -> vector<4x320xf32>
    %108 = arith.addf %103, %107 : vector<4x320xf32>
    %c0_98 = arith.constant 0 : index
    %c0_99 = arith.constant 0 : index
    %109 = vector.load %arg6[%c0_98, %c0_99] : memref<4x1xf32, #tpu.memory_space<vmem>>, vector<4x1xf32>
    %110 = vector.broadcast %109 : vector<4x1xf32> to vector<4x320xf32>
    %111 = arith.mulf %108, %110 : vector<4x320xf32>
    %c0_100 = arith.constant 0 : index
    %c0_101 = arith.constant 0 : index
    %112 = vector.load %arg7[%c0_100, %c0_101] : memref<4x1xf32, #tpu.memory_space<vmem>>, vector<4x1xf32>
    %113 = vector.broadcast %112 : vector<4x1xf32> to vector<4x320xf32>
    %114 = arith.addf %111, %113 : vector<4x320xf32>
    %115 = arith.negf %114 : vector<4x320xf32>
    %116 = math.exp %115 : vector<4x320xf32>
    %cst_102 = arith.constant 1.000000e+00 : f32
    %117 = vector.broadcast %cst_102 : f32 to vector<4x320xf32>
    %118 = arith.addf %117, %116 : vector<4x320xf32>
    %119 = arith.divf %117, %118 : vector<4x320xf32>
    %120 = arith.mulf %114, %119 : vector<4x320xf32>
    %121 = vector.extract_strided_slice %1 {offsets = [0, 42], sizes = [4, 320], strides = [1, 1]} : vector<4x512xf32> to vector<4x320xf32>
    %122 = arith.addf %120, %121 : vector<4x320xf32>
    %c0_103 = arith.constant 0 : index
    %c0_104 = arith.constant 0 : index
    %c0_105 = arith.constant 0 : index
    %123 = vector.load %arg9[%c0_103, %c0_104, %c0_105] : memref<1x4x320xf32, #tpu.memory_space<vmem>>, vector<1x4x320xf32>
    %124 = vector.shape_cast %123 : vector<1x4x320xf32> to vector<4x320xf32>
    %125 = vector.shape_cast %122 : vector<4x320xf32> to vector<1x4x320xf32>
    tpu.vector_store %arg9[%c0_103, %c0_104, %c0_105], %125 {strides = array<i32>} : memref<1x4x320xf32, #tpu.memory_space<vmem>>, vector<1x4x320xf32>,
    return
  }
  func.func @transform_0(%arg0: i32) -> (i32, i32, i32) {
    %c0_i32 = arith.constant 0 : i32
    %c0_i32_0 = arith.constant 0 : i32
    %c0_i32_1 = arith.constant 0 : i32
    return %arg0, %c0_i32, %c0_i32_0 : i32, i32, i32
  }
  func.func @transform_1(%arg0: i32) -> (i32, i32, i32, i32) {
    %c0_i32 = arith.constant 0 : i32
    %c0_i32_0 = arith.constant 0 : i32
    %c0_i32_1 = arith.constant 0 : i32
    %c0_i32_2 = arith.constant 0 : i32
    %c0_i32_3 = arith.constant 0 : i32
    return %c0_i32, %c0_i32_0, %c0_i32_1, %c0_i32_2 : i32, i32, i32, i32
  }
  func.func @transform_2(%arg0: i32) -> (i32, i32) {
    %c0_i32 = arith.constant 0 : i32
    %c0_i32_0 = arith.constant 0 : i32
    %c0_i32_1 = arith.constant 0 : i32
    return %c0_i32, %c0_i32_0 : i32, i32
  }
  func.func @transform_3(%arg0: i32) -> (i32, i32) {
    %c0_i32 = arith.constant 0 : i32
    %c0_i32_0 = arith.constant 0 : i32
    %c0_i32_1 = arith.constant 0 : i32
    return %c0_i32, %c0_i32_0 : i32, i32
  }
  func.func @transform_4(%arg0: i32) -> (i32, i32, i32, i32) {
    %c0_i32 = arith.constant 0 : i32
    %c0_i32_0 = arith.constant 0 : i32
    %c0_i32_1 = arith.constant 0 : i32
    %c0_i32_2 = arith.constant 0 : i32
    %c0_i32_3 = arith.constant 0 : i32
    return %c0_i32, %c0_i32_0, %c0_i32_1, %c0_i32_2 : i32, i32, i32, i32
  }
  func.func @transform_5(%arg0: i32) -> (i32, i32) {
    %c0_i32 = arith.constant 0 : i32
    %c0_i32_0 = arith.constant 0 : i32
    %c0_i32_1 = arith.constant 0 : i32
    return %c0_i32, %c0_i32_0 : i32, i32
  }
  func.func @transform_6(%arg0: i32) -> (i32, i32) {
    %c0_i32 = arith.constant 0 : i32
    %c0_i32_0 = arith.constant 0 : i32
    %c0_i32_1 = arith.constant 0 : i32
    return %c0_i32, %c0_i32_0 : i32, i32
  }
  func.func @transform_7(%arg0: i32) -> (i32, i32) {
    %c0_i32 = arith.constant 0 : i32
    %c0_i32_0 = arith.constant 0 : i32
    %c0_i32_1 = arith.constant 0 : i32
    return %c0_i32, %c0_i32_0 : i32, i32
  }
  func.func @transform_8(%arg0: i32) -> (i32, i32, i32) {
    %c0_i32 = arith.constant 0 : i32
    %c0_i32_0 = arith.constant 0 : i32
    %c0_i32_1 = arith.constant 0 : i32
    return %arg0, %c0_i32, %c0_i32_0 : i32, i32, i32
  }
}

module attributes {stable_mosaic.version = 11 : i64} {
  func.func @kernel(%arg0: i32, %arg1: memref<1x8x256xf32, #tpu.memory_space<vmem>>, %arg2: memref<1x4x256xf32, #tpu.memory_space<vmem>>, %arg3: memref<8x8xf32, #tpu.memory_space<vmem>>, %arg4: memref<8x4xf32, #tpu.memory_space<vmem>>, %arg5: memref<8x1xf32, #tpu.memory_space<vmem>>, %arg6: memref<8x1xf32, #tpu.memory_space<vmem>>, %arg7: memref<1x8x256xf32, #tpu.memory_space<vmem>>) attributes {dimension_semantics = [#tpu.dimension_semantics<parallel>], iteration_bounds = array<i64: 2>, scalar_prefetch = 0 : i64, scratch_operands = 0 : i64, tpu.core_type = #tpu.core_type<tc>, window_params = [{transform_indices = @transform_0, window_bounds = array<i64: 1, 8, 256>}, {transform_indices = @transform_1, window_bounds = array<i64: 1, 4, 256>}, {pipeline_mode = #tpu.pipeline_mode<synchronous>, transform_indices = @transform_2, window_bounds = array<i64: 8, 8>}, {pipeline_mode = #tpu.pipeline_mode<synchronous>, transform_indices = @transform_3, window_bounds = array<i64: 8, 4>}, {pipeline_mode = #tpu.pipeline_mode<synchronous>, transform_indices = @transform_4, window_bounds = array<i64: 8, 1>}, {pipeline_mode = #tpu.pipeline_mode<synchronous>, transform_indices = @transform_5, window_bounds = array<i64: 8, 1>}, {transform_indices = @transform_6, window_bounds = array<i64: 1, 8, 256>}]} {
    %cst = arith.constant 0.000000e+00 : f32
    %0 = vector.broadcast %cst : f32 to vector<8x256xf32>
    %c0 = arith.constant 0 : index
    %c0_0 = arith.constant 0 : index
    %1 = vector.load %arg3[%c0, %c0_0] : memref<8x8xf32, #tpu.memory_space<vmem>>, vector<8x8xf32>
    %c0_1 = arith.constant 0 : index
    %c0_2 = arith.constant 0 : index
    %c0_3 = arith.constant 0 : index
    %2 = vector.load %arg1[%c0_1, %c0_2, %c0_3] : memref<1x8x256xf32, #tpu.memory_space<vmem>>, vector<1x8x256xf32>
    %3 = vector.shape_cast %2 : vector<1x8x256xf32> to vector<8x256xf32>
    %cst_4 = arith.constant dense<0.000000e+00> : vector<8x256xf32>
    %4 = tpu.matmul %1, %3, %cst_4 {dimension_numbers = #tpu.dot_dimension_numbers<[1], [0], [0], [1], [0, 0, 1, 1], [], []>} : vector<8x8xf32>, vector<8x256xf32>, vector<8x256xf32> -> vector<8x256xf32>
    %5 = arith.addf %0, %4 : vector<8x256xf32>
    %c0_5 = arith.constant 0 : index
    %c0_6 = arith.constant 0 : index
    %6 = vector.load %arg4[%c0_5, %c0_6] : memref<8x4xf32, #tpu.memory_space<vmem>>, vector<8x4xf32>
    %c0_7 = arith.constant 0 : index
    %c0_8 = arith.constant 0 : index
    %c0_9 = arith.constant 0 : index
    %7 = vector.load %arg2[%c0_7, %c0_8, %c0_9] : memref<1x4x256xf32, #tpu.memory_space<vmem>>, vector<1x4x256xf32>
    %8 = vector.shape_cast %7 : vector<1x4x256xf32> to vector<4x256xf32>
    %cst_10 = arith.constant dense<0.000000e+00> : vector<8x256xf32>
    %9 = tpu.matmul %6, %8, %cst_10 {dimension_numbers = #tpu.dot_dimension_numbers<[1], [0], [0], [1], [0, 0, 1, 1], [], []>} : vector<8x4xf32>, vector<4x256xf32>, vector<8x256xf32> -> vector<8x256xf32>
    %10 = arith.addf %5, %9 : vector<8x256xf32>
    %c0_11 = arith.constant 0 : index
    %c0_12 = arith.constant 0 : index
    %11 = vector.load %arg5[%c0_11, %c0_12] : memref<8x1xf32, #tpu.memory_space<vmem>>, vector<8x1xf32>
    %12 = vector.broadcast %11 : vector<8x1xf32> to vector<8x256xf32>
    %13 = arith.mulf %10, %12 : vector<8x256xf32>
    %c0_13 = arith.constant 0 : index
    %c0_14 = arith.constant 0 : index
    %14 = vector.load %arg6[%c0_13, %c0_14] : memref<8x1xf32, #tpu.memory_space<vmem>>, vector<8x1xf32>
    %15 = vector.broadcast %14 : vector<8x1xf32> to vector<8x256xf32>
    %16 = arith.addf %13, %15 : vector<8x256xf32>
    %17 = arith.negf %16 : vector<8x256xf32>
    %18 = math.exp %17 : vector<8x256xf32>
    %cst_15 = arith.constant 1.000000e+00 : f32
    %19 = vector.broadcast %cst_15 : f32 to vector<8x256xf32>
    %20 = arith.addf %19, %18 : vector<8x256xf32>
    %21 = arith.divf %19, %20 : vector<8x256xf32>
    %22 = arith.mulf %16, %21 : vector<8x256xf32>
    %c0_16 = arith.constant 0 : index
    %c0_17 = arith.constant 0 : index
    %c0_18 = arith.constant 0 : index
    %23 = vector.load %arg7[%c0_16, %c0_17, %c0_18] : memref<1x8x256xf32, #tpu.memory_space<vmem>>, vector<1x8x256xf32>
    %24 = vector.shape_cast %23 : vector<1x8x256xf32> to vector<8x256xf32>
    %25 = vector.shape_cast %22 : vector<8x256xf32> to vector<1x8x256xf32>
    tpu.vector_store %arg7[%c0_16, %c0_17, %c0_18], %25 {strides = array<i32>} : memref<1x8x256xf32, #tpu.memory_space<vmem>>, vector<1x8x256xf32>,
    return
  }
  func.func @transform_0(%arg0: i32) -> (i32, i32, i32) {
    %c0_i32 = arith.constant 0 : i32
    %c0_i32_0 = arith.constant 0 : i32
    %c0_i32_1 = arith.constant 0 : i32
    return %arg0, %c0_i32, %c0_i32_0 : i32, i32, i32
  }
  func.func @transform_1(%arg0: i32) -> (i32, i32, i32) {
    %c0_i32 = arith.constant 0 : i32
    %c0_i32_0 = arith.constant 0 : i32
    %c0_i32_1 = arith.constant 0 : i32
    return %arg0, %c0_i32, %c0_i32_0 : i32, i32, i32
  }
  func.func @transform_2(%arg0: i32) -> (i32, i32) {
    %c0_i32 = arith.constant 0 : i32
    %c0_i32_0 = arith.constant 0 : i32
    %c0_i32_1 = arith.constant 0 : i32
    return %c0_i32, %c0_i32_0 : i32, i32
  }
  func.func @transform_3(%arg0: i32) -> (i32, i32) {
    %c0_i32 = arith.constant 0 : i32
    %c0_i32_0 = arith.constant 0 : i32
    %c0_i32_1 = arith.constant 0 : i32
    return %c0_i32, %c0_i32_0 : i32, i32
  }
  func.func @transform_4(%arg0: i32) -> (i32, i32) {
    %c0_i32 = arith.constant 0 : i32
    %c0_i32_0 = arith.constant 0 : i32
    %c0_i32_1 = arith.constant 0 : i32
    return %c0_i32, %c0_i32_0 : i32, i32
  }
  func.func @transform_5(%arg0: i32) -> (i32, i32) {
    %c0_i32 = arith.constant 0 : i32
    %c0_i32_0 = arith.constant 0 : i32
    %c0_i32_1 = arith.constant 0 : i32
    return %c0_i32, %c0_i32_0 : i32, i32
  }
  func.func @transform_6(%arg0: i32) -> (i32, i32, i32) {
    %c0_i32 = arith.constant 0 : i32
    %c0_i32_0 = arith.constant 0 : i32
    %c0_i32_1 = arith.constant 0 : i32
    return %arg0, %c0_i32, %c0_i32_0 : i32, i32, i32
  }
}

</mosaic_0001>

<bundles_post_ra>
// kernel: c2f_forward_pallas.3
= control target key start
LH: loop header
LB: loop body
LE: loop exit
PB: predicated region body
PF: predicated region fallthrough
CT: control target
= control target key end

     0   :  { %s437_s15 = smov 0   ;;  %s467_s0 = inlined_call_operand.vmem [shape: f32[2,4,256], index: 0, kind: input, shape index: {}]   ;;  %s468_s1 = inlined_call_operand.vmem [shape: f32[8,4], index: 1, kind: input, shape index: {}]   ;;  %s469_s2 = inlined_call_operand.vmem [shape: f32[8,1], index: 2, kind: input, shape index: {}]   ;;  %s470_s3 = inlined_call_operand.vmem [shape: f32[8,1], index: 3, kind: input, shape index: {}]   ;;  %s471_s4 = inlined_call_operand.vmem [shape: f32[2,8,256], index: 4, kind: output, shape index: {}]  }
   0x1 LB: > { %s366_s16 = sadd.s32 4294967295, %s409_s15   ;;  %p370_p0 = scmp.ge.s32.totalorder %s409_s15, 1  ;;  %s409_s15 = sphi %s437_s15, %s14_s15  }
   0x2   : > { %p162_p1 = scmp.lt.s32.totalorder %s409_s15, 3 }
   0x4   : > { %p163_p2 = pnand %p370_p0, %p162_p1 }
   0x5   : > { %p188_p3 = scmp.lt.s32.totalorder (!%p163_p2), %s366_s16, 1 }
   0x6   : > { %166 = sbr.rel (%p163_p2) target bundleno = 186 (0xba), region = 36 }
   0xb   : > { %v253_v0 = vld [vmem:[%s469_s2] sm:$0xff]  ;;  %v411_v1 = vmov 0   ;;  %s473_s16 = smov (!%p188_p3, %s366_s16), 1  ;;  %vm208_vm0 = vcmask 1043456   ;;  %vm204_vm1 = vcmask 31744  }
   0xc   : > { %394 = vset.pattern.permute.xlu0 %v411_v1  ;;  %s383_s19 = sshll.u32 %s473_s16, 3  ;;  %v261_v3 = vld [vmem:[%s470_s3] sm:$0xff]  ;;  %s384_s27 = sshll.u32 %s473_s16, 4 }
   0xd   : > { %256 = vperm.xlu0 %394, %v253_v0   ;;  %s192_s22 = scalar_lea.vmem %s467_s0, %s383_s19  ;;  %v198_v4 = vld [vmem:[%s468_s1] sm:$0xff]  ;;  %s197_s30 = scalar_lea.vmem %s471_s4, %s384_s27 }
   0xe   : > { %v199_v2 = vld [vmem:[%s192_s22] sm:$0xff] }
   0xf   : > { %201 = vst [vmem:[#allocation1] ss:$2 sm:$0xff] %v199_v2 }
  0x15   : > { %264 = vperm.xlu0 %394, %v261_v3  }
  0x16   : > { %v202_v5 = vld.sshfl [vmem:[#allocation1] sm:$0xff pattern:$0x75316420]  ;;  %v203_v6 = vld.sshfl [vmem:[#allocation1 + $0x8] sm:$0xff pattern:$0x75316420] }
  0x17   : > { %375 = vmatpush.msk.msra.mxu0 %vm208_vm0, %v202_v5  ;;  %377 = vmatpush.msk.msra.mxu1 %vm208_vm0, %v203_v6 }
  0x18   : > { %376 = vmatmul.msk.f32.vlgmr.msra.gmra.mxu0 %vm204_vm1, %v198_v4  ;;  %378 = vmatmul.msk.f32.vlgmr.msra.gmra.mxu1 %vm204_vm1, %v198_v4 }
  0x7f   : > { %v257_v7 = vpop.permute.xlu0 %256 }
  0x87   : > { %v265_v12 = vpop.permute.xlu0 %264 }
  0x95   : > { %v230_v8 = vpop.f32.mrf.mxu0  ;;  %v250_v9 = vpop.f32.mrf.mxu1 }
  0x96   : > { %v259_v10 = vmul.f32 %v257_v7, %v230_v8  ;;  %v260_v11 = vmul.f32 %v257_v7, %v250_v9 }
  0x98   : > { %v267_v13 = vadd.f32 %v265_v12, %v259_v10  ;;  %v268_v14 = vadd.f32 %v265_v12, %v260_v11 }
  0x9a   : > { %v379_v15 = vmul.f32 -1.442695, %v267_v13  ;;  %v380_v16 = vmul.f32 -1.442695, %v268_v14 }
  0x9c   : > { %395 = vpow2.f32 %v379_v15 }
  0x9d   : > { %397 = vpow2.f32 %v380_v16 }
  0xa2   : > { %v396_v17 = vpop.eup %395 }
  0xa3   : > { %v398_v18 = vpop.eup %397  ;;  %v275_v19 = vadd.f32 1.0, %v396_v17 }
  0xa4   : > { %v276_v20 = vadd.f32 1.0, %v398_v18 }
  0xa5   : > { %399 = vrcp.f32 %v275_v19  ;;  %v288_v26 = vand.u32 2147483648, %v275_v19  ;;  %v286_v29 = vand.u32 2147483647, %v275_v19  ;;  %vm282_vm4 = vweird.f32 %v275_v19 }
  0xa6   : > { %401 = vrcp.f32 %v276_v20  ;;  %v303_v30 = vand.u32 2147483648, %v276_v20  ;;  %v301_v32 = vand.u32 2147483647, %v276_v20  ;;  %vm297_vm6 = vweird.f32 %v276_v20 }
  0xa7   : > { %v289_v34 = vor.u32 1.1754944e-38, %v288_v26  ;;  %vm287_vm7 = vcmp.eq.f32.partialorder %v286_v29, 8.507059e+37 }
  0xa8   : > { %v304_v37 = vor.u32 1.1754944e-38, %v303_v30  ;;  %vm302_vm9 = vcmp.eq.f32.partialorder %v301_v32, 8.507059e+37 }
  0xab   : > { %v400_v21 = vpop.eup %399 }
  0xac   : > { %v402_v22 = vpop.eup %401  ;;  %v278_v23 = vmul.f32 %v400_v21, %v275_v19  ;;  %vm283_vm2 = vweird.f32 %v400_v21 }
  0xad   : > { %v293_v24 = vmul.f32 %v402_v22, %v276_v20  ;;  %vm298_vm3 = vweird.f32 %v402_v22  ;;  %vm284_vm5 = vmor %vm282_vm4, %vm283_vm2 }
  0xae   : > { %v279_v25 = vsub.f32 1.0, %v278_v23  ;;  %vm299_vm8 = vmor %vm297_vm6, %vm298_vm3 }
  0xaf   : > { %v294_v27 = vsub.f32 1.0, %v293_v24 }
  0xb0   : > { %v280_v28 = vmul.f32 %v400_v21, %v279_v25 }
  0xb1   : > { %v295_v31 = vmul.f32 %v402_v22, %v294_v27 }
  0xb2   : > { %v281_v33 = vadd.f32 %v400_v21, %v280_v28 }
  0xb3   : > { %v296_v35 = vadd.f32 %v402_v22, %v295_v31 }
  0xb4   : > { %v285_v36 = vsel %vm284_vm5, %v400_v21, %v281_v33 }
  0xb5   : > { %v290_v38 = vsel %vm287_vm7, %v289_v34, %v285_v36  ;;  %v300_v39 = vsel %vm299_vm8, %v402_v22, %v296_v35 }
  0xb6   : > { %v307_v40 = vmul.f32 %v290_v38, %v267_v13  ;;  %v305_v41 = vsel %vm302_vm9, %v304_v37, %v300_v39 }
  0xb7   : > { %v308_v42 = vmul.f32 %v305_v41, %v268_v14 }
  0xb8   : > { %309 = vst [vmem:[%s197_s30] sm:$0xff] %v307_v40 }
  0xb9   : > { %310 = vst [vmem:[%s197_s30 + $0x8] sm:$0xff] %v308_v42 }
  0xba PF: > { %s14_s15 = sadd.s32 1, %s409_s15  }
  0xbb   : > { %p11_p4 = scmp.ge.s32.totalorder %s14_s15, 4  }
  0xbd   :  { %13 = sbr.rel (!%p11_p4) target bundleno = 1 (0x1), region = 66 }

// kernel: c2f_forward_pallas.5
= control target key start
LH: loop header
LB: loop body
LE: loop exit
PB: predicated region body
PF: predicated region fallthrough
CT: control target
= control target key end

     0   :  { %s585_s21 = smov 0   ;;  %s625_s0 = inlined_call_operand.vmem [shape: f32[2,8,256], index: 0, kind: input, shape index: {}]   ;;  %s626_s1 = inlined_call_operand.vmem [shape: f32[2,4,256], index: 1, kind: input, shape index: {}]   ;;  %s627_s2 = inlined_call_operand.vmem [shape: f32[8,8], index: 2, kind: input, shape index: {}]   ;;  %s628_s3 = inlined_call_operand.vmem [shape: f32[8,4], index: 3, kind: input, shape index: {}]   ;;  %s629_s4 = inlined_call_operand.vmem [shape: f32[8,1], index: 4, kind: input, shape index: {}]   ;;  %s630_s5 = inlined_call_operand.vmem [shape: f32[8,1], index: 5, kind: input, shape index: {}]   ;;  %s631_s6 = inlined_call_operand.vmem [shape: f32[2,8,256], index: 6, kind: output, shape index: {}]  }
   0x1 LB: > { %s499_s22 = sadd.s32 4294967295, %s547_s21   ;;  %p503_p0 = scmp.ge.s32.totalorder %s547_s21, 1  ;;  %s547_s21 = sphi %s585_s21, %s16_s21  }
   0x2   : > { %p222_p1 = scmp.lt.s32.totalorder %s547_s21, 3 }
   0x4   : > { %p223_p2 = pnand %p503_p0, %p222_p1 }
   0x5   : > { %p257_p3 = scmp.lt.s32.totalorder (!%p223_p2), %s499_s22, 1 }
   0x6   : > { %226 = sbr.rel (%p223_p2) target bundleno = 189 (0xbd), region = 44 }
   0xb   : > { %v374_v0 = vld [vmem:[%s629_s4] sm:$0xff]  ;;  %v549_v1 = vmov 0   ;;  %s633_s22 = smov (!%p257_p3, %s499_s22), 1  ;;  %vm330_vm0 = vcmask 64512   ;;  %vm285_vm1 = vcmask 1043456   ;;  %vm281_vm2 = vcmask 31744  }
   0xc   : > { %532 = vset.pattern.permute.xlu0 %v549_v1  ;;  %s520_s25 = sshll.u32 %s633_s22, 4  ;;  %s521_s26 = sshll.u32 %s633_s22, 3  ;;  %v272_v2 = vld [vmem:[%s627_s2] sm:$0xff] }
   0xd   : > { %377 = vperm.xlu0 %532, %v374_v0   ;;  %s261_s29 = scalar_lea.vmem %s625_s0, %s520_s25  ;;  %s266_s8 = scalar_lea.vmem %s626_s1, %s521_s26  ;;  %v382_v6 = vld [vmem:[%s630_s5] sm:$0xff] }
   0xe   : > { %v273_v3 = vld [vmem:[%s261_s29] sm:$0xff]  ;;  %v274_v5 = vld [vmem:[%s261_s29 + $0x8] sm:$0xff]  ;;  %s271_s17 = scalar_lea.vmem %s631_s6, %s520_s25 }
   0xf   : > { %v276_v4 = vld [vmem:[%s266_s8] sm:$0xff]  ;;  %349 = vmatpush.msra.mxu2 %v273_v3  ;;  %369 = vmatpush.msra.mxu3 %v274_v5 }
  0x10   : > { %278 = vst [vmem:[#allocation1] ss:$2 sm:$0xff] %v276_v4  ;;  %514 = vmatmul.msk.f32.vlgmr.msra.gmra.mxu2 %vm330_vm0, %v272_v2  ;;  %515 = vmatmul.msk.f32.vlgmr.msra.gmra.mxu3 %vm330_vm0, %v272_v2  ;;  %v275_v7 = vld [vmem:[%s628_s3] sm:$0xff] }
  0x15   : > { %385 = vperm.xlu0 %532, %v382_v6  }
  0x17   : > { %v279_v8 = vld.sshfl [vmem:[#allocation1] sm:$0xff pattern:$0x75316420]  ;;  %v280_v9 = vld.sshfl [vmem:[#allocation1 + $0x8] sm:$0xff pattern:$0x75316420] }
  0x18   : > { %510 = vmatpush.msk.msra.mxu0 %vm285_vm1, %v279_v8  ;;  %512 = vmatpush.msk.msra.mxu1 %vm285_vm1, %v280_v9 }
  0x19   : > { %511 = vmatmul.msk.f32.vlgmr.msra.gmra.mxu0 %vm281_vm2, %v275_v7  ;;  %513 = vmatmul.msk.f32.vlgmr.msra.gmra.mxu1 %vm281_vm2, %v275_v7 }
  0x7f   : > { %v378_v10 = vpop.permute.xlu0 %377 }
  0x87   : > { %v386_v19 = vpop.permute.xlu0 %385 }
  0x93   : > { %v351_v11 = vpop.f32.mrf.mxu2  ;;  %v371_v12 = vpop.f32.mrf.mxu3 }
  0x96   : > { %v307_v13 = vpop.f32.mrf.mxu0  ;;  %v327_v14 = vpop.f32.mrf.mxu1 }
  0x97   : > { %v352_v15 = vadd.f32 %v351_v11, %v307_v13  ;;  %v372_v16 = vadd.f32 %v371_v12, %v327_v14 }
  0x99   : > { %v380_v17 = vmul.f32 %v378_v10, %v352_v15  ;;  %v381_v18 = vmul.f32 %v378_v10, %v372_v16 }
  0x9b   : > { %v388_v20 = vadd.f32 %v386_v19, %v380_v17  ;;  %v389_v21 = vadd.f32 %v386_v19, %v381_v18 }
  0x9d   : > { %v516_v22 = vmul.f32 -1.442695, %v388_v20  ;;  %v517_v23 = vmul.f32 -1.442695, %v389_v21 }
  0x9f   : > { %533 = vpow2.f32 %v516_v22 }
  0xa0   : > { %535 = vpow2.f32 %v517_v23 }
  0xa5   : > { %v534_v24 = vpop.eup %533 }
  0xa6   : > { %v536_v25 = vpop.eup %535  ;;  %v396_v26 = vadd.f32 1.0, %v534_v24 }
  0xa7   : > { %v397_v27 = vadd.f32 1.0, %v536_v25 }
  0xa8   : > { %537 = vrcp.f32 %v396_v26  ;;  %v409_v33 = vand.u32 2147483648, %v396_v26  ;;  %v407_v36 = vand.u32 2147483647, %v396_v26  ;;  %vm403_vm5 = vweird.f32 %v396_v26 }
  0xa9   : > { %539 = vrcp.f32 %v397_v27  ;;  %v424_v37 = vand.u32 2147483648, %v397_v27  ;;  %v422_v39 = vand.u32 2147483647, %v397_v27  ;;  %vm418_vm7 = vweird.f32 %v397_v27 }
  0xaa   : > { %v410_v41 = vor.u32 1.1754944e-38, %v409_v33  ;;  %vm408_vm8 = vcmp.eq.f32.partialorder %v407_v36, 8.507059e+37 }
  0xab   : > { %v425_v44 = vor.u32 1.1754944e-38, %v424_v37  ;;  %vm423_vm10 = vcmp.eq.f32.partialorder %v422_v39, 8.507059e+37 }
  0xae   : > { %v538_v28 = vpop.eup %537 }
  0xaf   : > { %v540_v29 = vpop.eup %539  ;;  %v399_v30 = vmul.f32 %v538_v28, %v396_v26  ;;  %vm404_vm3 = vweird.f32 %v538_v28 }
  0xb0   : > { %v414_v31 = vmul.f32 %v540_v29, %v397_v27  ;;  %vm419_vm4 = vweird.f32 %v540_v29  ;;  %vm405_vm6 = vmor %vm403_vm5, %vm404_vm3 }
  0xb1   : > { %v400_v32 = vsub.f32 1.0, %v399_v30  ;;  %vm420_vm9 = vmor %vm418_vm7, %vm419_vm4 }
  0xb2   : > { %v415_v34 = vsub.f32 1.0, %v414_v31 }
  0xb3   : > { %v401_v35 = vmul.f32 %v538_v28, %v400_v32 }
  0xb4   : > { %v416_v38 = vmul.f32 %v540_v29, %v415_v34 }
  0xb5   : > { %v402_v40 = vadd.f32 %v538_v28, %v401_v35 }
  0xb6   : > { %v417_v42 = vadd.f32 %v540_v29, %v416_v38 }
  0xb7   : > { %v406_v43 = vsel %vm405_vm6, %v538_v28, %v402_v40 }
  0xb8   : > { %v411_v45 = vsel %vm408_vm8, %v410_v41, %v406_v43  ;;  %v421_v46 = vsel %vm420_vm9, %v540_v29, %v417_v42 }
  0xb9   : > { %v428_v47 = vmul.f32 %v411_v45, %v388_v20  ;;  %v426_v48 = vsel %vm423_vm10, %v425_v44, %v421_v46 }
  0xba   : > { %v429_v49 = vmul.f32 %v426_v48, %v389_v21 }
  0xbb   : > { %430 = vst [vmem:[%s271_s17] sm:$0xff] %v428_v47 }
  0xbc   : > { %431 = vst [vmem:[%s271_s17 + $0x8] sm:$0xff] %v429_v49 }
  0xbd PF: > { %s16_s21 = sadd.s32 1, %s547_s21  }
  0xbe   : > { %p13_p4 = scmp.ge.s32.totalorder %s16_s21, 4  }
  0xc0   :  { %15 = sbr.rel (!%p13_p4) target bundleno = 1 (0x1), region = 77 }

// kernel: c2f_forward_pallas.4
= control target key start
LH: loop header
LB: loop body
LE: loop exit
PB: predicated region body
PF: predicated region fallthrough
CT: control target
= control target key end

     0   :  { %s2352_s27 = smov 0   ;;  %s2704_s0 = inlined_call_operand.vmem [shape: f32[2,4,512], index: 0, kind: input, shape index: {}]   ;;  %s2705_s1 = inlined_call_operand.vmem [shape: f32[3,3,4,4], index: 1, kind: input, shape index: {}]   ;;  %s2706_s2 = inlined_call_operand.vmem [shape: f32[4,1], index: 2, kind: input, shape index: {}]   ;;  %s2707_s3 = inlined_call_operand.vmem [shape: f32[4,1], index: 3, kind: input, shape index: {}]   ;;  %s2708_s4 = inlined_call_operand.vmem [shape: f32[3,3,4,4], index: 4, kind: input, shape index: {}]   ;;  %s2709_s5 = inlined_call_operand.vmem [shape: f32[4,1], index: 5, kind: input, shape index: {}]   ;;  %s2710_s6 = inlined_call_operand.vmem [shape: f32[4,1], index: 6, kind: input, shape index: {}]   ;;  %s2711_s7 = inlined_call_operand.vmem [shape: f32[1,384], index: 7, kind: input, shape index: {}]   ;;  %s2712_s8 = inlined_call_operand.vmem [shape: f32[2,4,320], index: 8, kind: output, shape index: {}]  }
   0x1 LB: > { %s2105_s28 = sadd.s32 4294967295, %s2296_s27   ;;  %p2109_p0 = scmp.ge.s32.totalorder %s2296_s27, 1  ;;  %s2296_s27 = sphi %s2352_s27, %s18_s27  }
   0x2   : > { %p262_p1 = scmp.lt.s32.totalorder %s2296_s27, 3 }
   0x4   : > { %p263_p2 = pnand %p2109_p0, %p262_p1 }
   0x5   : > { %p296_p3 = scmp.lt.s32.totalorder (!%p263_p2), %s2105_s28, 1  ;;  %s2298_s11 = smov (!%p263_p2), 127  }
   0x6   : > { %266 = sbr.rel (%p263_p2) target bundleno = 743 (0x2e7), region = 52  ;;  %s2299_s12 = smov (!%p263_p2), 126  }
   0x7   : > { %s2300_s13 = smov (!%p263_p2), 108   ;;  %s2301_s14 = smov (!%p263_p2), 107  }
   0x8   : > { %s2302_s15 = smov (!%p263_p2), 106   ;;  %s2303_s16 = smov (!%p263_p2), 88  }
   0x9   : > { %s2304_s17 = smov (!%p263_p2), 87   ;;  %s2305_s18 = smov (!%p263_p2), 86  }
   0xb   : > { %s2731_s28 = smov (!%p296_p3, %s2105_s28), 1  ;;  %vm336_vm0 = vcmask 1043456   ;;  %vm332_vm1 = vcmask 31744   ;;  %v308_v38 = vld [vmem:[%s2705_s1] sm:$0xf]  ;;  %vm328_vm2 = vcmask 1039360  }
   0xc   : > { %s2245_s29 = sshll.u32 %s2731_s28, 4  ;;  %vm495_vm3 = vcmask 1031168   ;;  %v2113_v46 = vld [vmem:[%s2705_s1 + $0x4] sm:$0xf]  ;;  %v2126_v51 = vld [vmem:[%s2705_s1 + $0x8] sm:$0xf] }
   0xd   : > { %s300_s10 = scalar_lea.vmem %s2704_s0, %s2245_s29  ;;  %vm588_vm4 = vcmask 883712   ;;  %v2133_v56 = vld [vmem:[%s2705_s1 + $0xc] sm:$0xf]  ;;  %vm2717_vm5 = vcmask 875520   ;;  %vm2716_vm6 = vcmask 867328   ;;  %vm2715_vm7 = vcmask 719872  }
   0xe   : > { %v2366_v0 = vld [vmem:[%s300_s10 + $0x8] sm:$0xff]  ;;  %v2368_v1 = vld [vmem:[%s300_s10] sm:$0xff]  ;;  %vm2714_vm8 = vcmask 711680   ;;  %vm2713_vm9 = vcmask 703488  }
   0xf   : > { %315 = vst [vmem:[#allocation1 + $0x10] ss:$2 sm:$0xff] %v2366_v0 }
  0x10   : > { %313 = vst [vmem:[#allocation1] ss:$2 sm:$0xff] %v2368_v1 }
  0x16   : > { %v318_v2 = vld.sshfl [vmem:[#allocation1 + $0x10] sm:$0xff pattern:$0x75316420]  ;;  %v319_v3 = vld.sshfl [vmem:[#allocation1 + $0x18] sm:$0xff pattern:$0x75316420] }
  0x17   : > { %324 = vrot.lane.b32.xlu0 %v318_v2, %s2298_s11  ;;  %v316_v4 = vld.sshfl [vmem:[#allocation1] sm:$0xff pattern:$0x75316420]  ;;  %405 = vst [vmem:[#allocation1 + $0x10] ss:$2 sm:$0xff] %v2366_v0 }
  0x18   : > { %320 = vrot.lane.b32.xlu1 %v316_v4, %s2298_s11  ;;  %v317_v5 = vld.sshfl [vmem:[#allocation1 + $0x8] sm:$0xff pattern:$0x75316420]  ;;  %v2140_v2 = vld [vmem:[%s2705_s1 + $0x10] sm:$0xf] }
  0x19   : > { %403 = vst [vmem:[#allocation1] ss:$2 sm:$0xff] %v2368_v1 }
  0x1e   : > { %v2376_v6 = vld.sshfl [vmem:[#allocation1 + $0x10] sm:$0xff pattern:$0x75316420] }
  0x1f   : > { %326 = vrot.lane.b32.xlu0 %v319_v3, %s2298_s11  ;;  %482 = vst [vmem:[#allocation1 + $0x10] ss:$2 sm:$0xff] %v2366_v0 }
  0x20   : > { %322 = vrot.lane.b32.xlu1 %v317_v5, %s2298_s11  ;;  %v2381_v7 = vld.sshfl [vmem:[#allocation1] sm:$0xff pattern:$0x75316420]  ;;  %v2383_v8 = vld.sshfl [vmem:[#allocation1 + $0x8] sm:$0xff pattern:$0x75316420] }
  0x21   : > { %480 = vst [vmem:[#allocation1] ss:$2 sm:$0xff] %v2368_v1  ;;  %2120 = vmatpush.msk.msra.mxu3 %vm336_vm0, %v2381_v7 }
  0x22   : > { %2121 = vmatmul.msk.f32.vlgmr.msra.gmra.mxu3 %vm332_vm1, %v308_v38 }
  0x26   : > { %v485_v9 = vld.sshfl [vmem:[#allocation1 + $0x10] sm:$0xff pattern:$0x75316420]  ;;  %v486_v10 = vld.sshfl [vmem:[#allocation1 + $0x18] sm:$0xff pattern:$0x75316420] }
  0x27   : > { %491 = vrot.lane.b32.xlu0 %v485_v9, %s2299_s12  ;;  %575 = vst [vmem:[#allocation1 + $0x10] ss:$2 sm:$0xff] %v2366_v0 }
  0x28   : > { %v483_v11 = vld.sshfl [vmem:[#allocation1] sm:$0xff pattern:$0x75316420]  ;;  %v484_v12 = vld.sshfl [vmem:[#allocation1 + $0x8] sm:$0xff pattern:$0x75316420] }
  0x29   : > { %487 = vrot.lane.b32.xlu2 %v483_v11, %s2299_s12  ;;  %573 = vst [vmem:[#allocation1] ss:$2 sm:$0xff] %v2368_v1 }
  0x2e   : > { %v578_v13 = vld.sshfl [vmem:[#allocation1 + $0x10] sm:$0xff pattern:$0x75316420]  ;;  %v579_v14 = vld.sshfl [vmem:[#allocation1 + $0x18] sm:$0xff pattern:$0x75316420] }
  0x2f   : > { %493 = vrot.lane.b32.xlu0 %v486_v10, %s2299_s12  ;;  %668 = vst [vmem:[#allocation1 + $0x10] ss:$2 sm:$0xff] %v2366_v0 }
  0x30   : > { %v577_v15 = vld.sshfl [vmem:[#allocation1 + $0x8] sm:$0xff pattern:$0x75316420]  ;;  %v576_v16 = vld.sshfl [vmem:[#allocation1] sm:$0xff pattern:$0x75316420] }
  0x31   : > { %582 = vrot.lane.b32.xlu1 %v577_v15, %s2300_s13  ;;  %489 = vrot.lane.b32.xlu2 %v484_v12, %s2299_s12  ;;  %666 = vst [vmem:[#allocation1] ss:$2 sm:$0xff] %v2368_v1  ;;  %v2147_v12 = vld [vmem:[%s2705_s1 + $0x14] sm:$0xf] }
  0x36   : > { %v671_v17 = vld.sshfl [vmem:[#allocation1 + $0x10] sm:$0xff pattern:$0x75316420]  ;;  %v672_v18 = vld.sshfl [vmem:[#allocation1 + $0x18] sm:$0xff pattern:$0x75316420] }
  0x37   : > { %677 = vrot.lane.b32.xlu0 %v671_v17, %s2301_s14  ;;  %761 = vst [vmem:[#allocation1 + $0x10] ss:$2 sm:$0xff] %v2366_v0  ;;  %v2154_v17 = vld [vmem:[%s2705_s1 + $0x18] sm:$0xf] }
  0x38   : > { %v669_v19 = vld.sshfl [vmem:[#allocation1] sm:$0xff pattern:$0x75316420]  ;;  %v670_v20 = vld.sshfl [vmem:[#allocation1 + $0x8] sm:$0xff pattern:$0x75316420] }
  0x39   : > { %580 = vrot.lane.b32.xlu1 %v576_v16, %s2300_s13  ;;  %584 = vrot.lane.b32.xlu2 %v578_v13, %s2300_s13  ;;  %759 = vst [vmem:[#allocation1] ss:$2 sm:$0xff] %v2368_v1 }
  0x3e   : > { %v764_v21 = vld.sshfl [vmem:[#allocation1 + $0x10] sm:$0xff pattern:$0x75316420]  ;;  %v765_v22 = vld.sshfl [vmem:[#allocation1 + $0x18] sm:$0xff pattern:$0x75316420] }
  0x3f   : > { %675 = vrot.lane.b32.xlu0 %v670_v20, %s2301_s14  ;;  %854 = vst [vmem:[#allocation1 + $0x10] ss:$2 sm:$0xff] %v2366_v0 }
  0x40   : > { %v762_v23 = vld.sshfl [vmem:[#allocation1] sm:$0xff pattern:$0x75316420]  ;;  %v763_v24 = vld.sshfl [vmem:[#allocation1 + $0x8] sm:$0xff pattern:$0x75316420] }
  0x41   : > { %679 = vrot.lane.b32.xlu1 %v672_v18, %s2301_s14  ;;  %586 = vrot.lane.b32.xlu2 %v579_v14, %s2300_s13  ;;  %852 = vst [vmem:[#allocation1] ss:$2 sm:$0xff] %v2368_v1 }
  0x46   : > { %v857_v25 = vld.sshfl [vmem:[#allocation1 + $0x10] sm:$0xff pattern:$0x75316420]  ;;  %v858_v26 = vld.sshfl [vmem:[#allocation1 + $0x18] sm:$0xff pattern:$0x75316420] }
  0x47   : > { %772 = vrot.lane.b32.xlu0 %v765_v22, %s2302_s15  ;;  %947 = vst [vmem:[#allocation1 + $0x10] ss:$2 sm:$0xff] %v2366_v0  ;;  %v1138_v22 = vld [vmem:[%s2707_s3] sm:$0xf] }
  0x48   : > { %v856_v27 = vld.sshfl [vmem:[#allocation1 + $0x8] sm:$0xff pattern:$0x75316420]  ;;  %v855_v28 = vld.sshfl [vmem:[#allocation1] sm:$0xff pattern:$0x75316420] }
  0x49   : > { %766 = vrot.lane.b32.xlu1 %v762_v23, %s2302_s15  ;;  %673 = vrot.lane.b32.xlu2 %v669_v19, %s2301_s14  ;;  %945 = vst [vmem:[#allocation1] ss:$2 sm:$0xff] %v2368_v1  ;;  %v2161_v19 = vld [vmem:[%s2705_s1 + $0x1c] sm:$0xf]  ;;  %v1129_v23 = vld [vmem:[%s2706_s2] sm:$0xf] }
  0x4e   : > { %v950_v29 = vld.sshfl [vmem:[#allocation1 + $0x10] sm:$0xff pattern:$0x75316420]  ;;  %v951_v30 = vld.sshfl [vmem:[#allocation1 + $0x18] sm:$0xff pattern:$0x75316420] }
  0x4f   : > { %859 = vrot.lane.b32.xlu0 %v855_v28, %s2303_s16  ;;  %1040 = vst [vmem:[#allocation1 + $0x10] ss:$2 sm:$0xff] %v2366_v0 }
  0x50   : > { %v949_v31 = vld.sshfl [vmem:[#allocation1 + $0x8] sm:$0xff pattern:$0x75316420]  ;;  %v948_v32 = vld.sshfl [vmem:[#allocation1] sm:$0xff pattern:$0x75316420] }
  0x51   : > { %861 = vrot.lane.b32.xlu1 %v856_v27, %s2303_s16  ;;  %768 = vrot.lane.b32.xlu2 %v763_v24, %s2302_s15  ;;  %1038 = vst [vmem:[#allocation1] ss:$2 sm:$0xff] %v2368_v1  ;;  %v2306_v24 = vmov 0  }
  0x52   : > { %2265 = vset.pattern.permute.xlu0 %v2306_v24  ;;  %2264 = vset.pattern.permute.xlu2 %v2306_v24 }
  0x56   : > { %v1043_v33 = vld.sshfl [vmem:[#allocation1 + $0x10] sm:$0xff pattern:$0x75316420]  ;;  %v1044_v34 = vld.sshfl [vmem:[#allocation1 + $0x18] sm:$0xff pattern:$0x75316420] }
  0x57   : > { %956 = vrot.lane.b32.xlu0 %v950_v29, %s2304_s17  ;;  %2024 = vst [vmem:[#allocation1 + $0x10] ss:$2 sm:$0xff] %v2366_v0 }
  0x58   : > { %v1042_v35 = vld.sshfl [vmem:[#allocation1 + $0x8] sm:$0xff pattern:$0x75316420]  ;;  %v1041_v36 = vld.sshfl [vmem:[#allocation1] sm:$0xff pattern:$0x75316420] }
  0x59   : > { %863 = vrot.lane.b32.xlu1 %v857_v25, %s2303_s16  ;;  %770 = vrot.lane.b32.xlu2 %v764_v21, %s2302_s15  ;;  %2022 = vst [vmem:[#allocation1] ss:$2 sm:$0xff] %v2368_v1 }
  0x5f   : > { %958 = vrot.lane.b32.xlu0 %v951_v30, %s2304_s17 }
  0x61   : > { %865 = vrot.lane.b32.xlu1 %v858_v26, %s2303_s16  ;;  %954 = vrot.lane.b32.xlu2 %v949_v31, %s2304_s17 }
  0x67   : > { %1045 = vrot.lane.b32.xlu0 %v1041_v36, %s2305_s18 }
  0x69   : > { %1049 = vrot.lane.b32.xlu1 %v1043_v33, %s2305_s18  ;;  %952 = vrot.lane.b32.xlu2 %v948_v32, %s2304_s17 }
  0x6f   : > { %1141 = vperm.xlu0 %2265, %v1138_v22  }
  0x71   : > { %1047 = vrot.lane.b32.xlu1 %v1042_v35, %s2305_s18  ;;  %1051 = vrot.lane.b32.xlu2 %v1044_v34, %s2305_s18  ;;  %v2168_v35 = vld [vmem:[%s2705_s1 + $0x20] sm:$0xf] }
  0x79   : > { %1132 = vperm.xlu2 %2264, %v1129_v23  }
  0x83   : > { %v488_v37 = vpop.permute.xlu2 %487 }
  0x89   : > { %v325_v39 = vpop.permute.xlu0 %324 }
  0x8a   : > { %v321_v40 = vpop.permute.xlu1 %320 }
  0x8b   : > { %v490_v41 = vpop.permute.xlu2 %489 }
  0x8c   : > { %v496_v45 = vsel %vm495_vm3, %v488_v37, %v490_v41 }
  0x91   : > { %v327_v42 = vpop.permute.xlu0 %326 }
  0x92   : > { %v323_v43 = vpop.permute.xlu1 %322  ;;  %v331_v44 = vsel %vm328_vm2, %v325_v39, %v327_v42 }
  0x93   : > { %v329_v47 = vsel %vm328_vm2, %v321_v40, %v323_v43  ;;  %v330_v48 = vsel %vm328_vm2, %v323_v43, %v325_v39  ;;  %2118 = vmatpush.msk.msra.mxu2 %vm336_vm0, %v331_v44  ;;  %v585_v49 = vpop.permute.xlu2 %584 }
  0x94   : > { %2114 = vmatpush.msk.msra.mxu0 %vm336_vm0, %v329_v47  ;;  %2116 = vmatpush.msk.msra.mxu1 %vm336_vm0, %v330_v48 }
  0x95   : > { %2127 = vmatpush.msk.msrb.mxu2 %vm336_vm0, %v496_v45  ;;  %2115 = vmatmul.msk.f32.vlgmr.msra.gmra.mxu0 %vm332_vm1, %v2113_v46 }
  0x96   : > { %2122 = vmatpush.msk.msrb.mxu0 %vm336_vm0, %v2383_v8  ;;  %2119 = vmatmul.msk.f32.vlgmr.msra.gmra.mxu2 %vm332_vm1, %v2113_v46 }
  0x97   : > { %2117 = vmatmul.msk.f32.vlgmr.msra.gmra.mxu1 %vm332_vm1, %v2113_v46 }
  0x98   : > { %2124 = vmatpush.msk.msrb.mxu1 %vm336_vm0, %v2376_v6 }
  0x99   : > { %v492_v50 = vpop.permute.xlu0 %491 }
  0x9a   : > { %v497_v52 = vsel %vm495_vm3, %v490_v41, %v492_v50 }
  0x9b   : > { %v587_v53 = vpop.permute.xlu2 %586  ;;  %2129 = vmatpush.msk.msrb.mxu3 %vm336_vm0, %v497_v52 }
  0x9c   : > { %v591_v54 = vsel %vm588_vm4, %v585_v49, %v587_v53  ;;  %2130 = vmatmul.msk.f32.vlgmr.msrb.gmra.mxu3 %vm332_vm1, %v2126_v51 }
  0x9d   : > { %2123 = vmatmul.msk.f32.vlgmr.msrb.gmra.mxu0 %vm332_vm1, %v308_v38  ;;  %2138 = vmatpush.msk.msra.mxu3 %vm336_vm0, %v591_v54 }
  0x9e   : > { %2128 = vmatmul.msk.f32.vlgmr.msrb.gmra.mxu2 %vm332_vm1, %v2126_v51 }
  0x9f   : > { %2125 = vmatmul.msk.f32.vlgmr.msrb.gmra.mxu1 %vm332_vm1, %v308_v38 }
  0xa1   : > { %v494_v55 = vpop.permute.xlu0 %493 }
  0xa2   : > { %v498_v57 = vsel %vm495_vm3, %v492_v50, %v494_v55 }
  0xa3   : > { %v583_v58 = vpop.permute.xlu1 %582  ;;  %2131 = vmatpush.msk.msra.mxu0 %vm336_vm0, %v498_v57  ;;  %v674_v59 = vpop.permute.xlu2 %673 }
  0xa4   : > { %v590_v60 = vsel %vm588_vm4, %v583_v58, %v585_v49  ;;  %2139 = vmatmul.msk.f32.vlgmr.msra.gmra.mxu3 %vm332_vm1, %v2133_v56 }
  0xa5   : > { %2136 = vmatpush.msk.msra.mxu2 %vm336_vm0, %v590_v60  ;;  %2132 = vmatmul.msk.f32.vlgmr.msra.gmra.mxu0 %vm332_vm1, %v2126_v51  ;;  %v435_v44 = vpop.f32.mrf.mxu3 }
  0xa6   : > { %2137 = vmatmul.msk.f32.vlgmr.msra.gmra.mxu2 %vm332_vm1, %v2133_v56 }
  0xa9   : > { %v678_v61 = vpop.permute.xlu0 %677 }
  0xab   : > { %v581_v62 = vpop.permute.xlu1 %580  ;;  %v769_v63 = vpop.permute.xlu2 %768 }
  0xac   : > { %v589_v0 = vsel %vm588_vm4, %v581_v62, %v583_v58 }
  0xad   : > { %2134 = vmatpush.msk.msra.mxu1 %vm336_vm0, %v589_v0 }
  0xae   : > { %2135 = vmatmul.msk.f32.vlgmr.msra.gmra.mxu1 %vm332_vm1, %v2133_v56 }
  0xb1   : > { %v676_v1 = vpop.permute.xlu0 %675 }
  0xb2   : > { %v682_v3 = vsel %vm2717_vm5, %v674_v59, %v676_v1  ;;  %v683_v4 = vsel %vm2717_vm5, %v676_v1, %v678_v61 }
  0xb3   : > { %v680_v5 = vpop.permute.xlu1 %679  ;;  %2143 = vmatpush.msk.msrb.mxu1 %vm336_vm0, %v683_v4  ;;  %2141 = vmatpush.msk.msrb.mxu0 %vm336_vm0, %v682_v3  ;;  %v771_v6 = vpop.permute.xlu2 %770 }
  0xb4   : > { %v684_v7 = vsel %vm2717_vm5, %v678_v61, %v680_v5  ;;  %v776_v8 = vsel %vm2716_vm6, %v769_v63, %v771_v6  ;;  %2142 = vmatmul.msk.f32.vlgmr.msrb.gmra.mxu0 %vm332_vm1, %v2140_v2 }
  0xb5   : > { %2145 = vmatpush.msk.msrb.mxu2 %vm336_vm0, %v684_v7  ;;  %2150 = vmatpush.msk.msra.mxu0 %vm336_vm0, %v776_v8 }
  0xb6   : > { %2144 = vmatmul.msk.f32.vlgmr.msrb.gmra.mxu1 %vm332_vm1, %v2140_v2  ;;  %2146 = vmatmul.msk.f32.vlgmr.msrb.gmra.mxu2 %vm332_vm1, %v2140_v2 }
  0xb9   : > { %v773_v9 = vpop.permute.xlu0 %772 }
  0xba   : > { %v777_v10 = vsel %vm2716_vm6, %v771_v6, %v773_v9 }
  0xbb   : > { %v767_v11 = vpop.permute.xlu1 %766  ;;  %v955_v13 = vpop.permute.xlu2 %954  ;;  %2152 = vmatpush.msk.msra.mxu1 %vm336_vm0, %v777_v10 }
  0xbc   : > { %v775_v14 = vsel %vm2716_vm6, %v767_v11, %v769_v63  ;;  %2151 = vmatmul.msk.f32.vlgmr.msra.gmra.mxu0 %vm332_vm1, %v2147_v12 }
  0xbd   : > { %2148 = vmatpush.msk.msrb.mxu3 %vm336_vm0, %v775_v14 }
  0xbe   : > { %2149 = vmatmul.msk.f32.vlgmr.msrb.gmra.mxu3 %vm332_vm1, %v2147_v12  ;;  %2153 = vmatmul.msk.f32.vlgmr.msra.gmra.mxu1 %vm332_vm1, %v2147_v12 }
  0xc1   : > { %v860_v15 = vpop.permute.xlu0 %859 }
  0xc3   : > { %v862_v16 = vpop.permute.xlu1 %861  ;;  %v953_v18 = vpop.permute.xlu2 %952 }
  0xc4   : > { %v868_v20 = vsel %vm2715_vm7, %v860_v15, %v862_v16  ;;  %v961_v21 = vsel %vm2714_vm8, %v953_v18, %v955_v13 }
  0xc5   : > { %2155 = vmatpush.msk.msra.mxu2 %vm336_vm0, %v868_v20  ;;  %2162 = vmatpush.msk.msrb.mxu1 %vm336_vm0, %v961_v21 }
  0xc6   : > { %2156 = vmatmul.msk.f32.vlgmr.msra.gmra.mxu2 %vm332_vm1, %v2154_v17  ;;  %2163 = vmatmul.msk.f32.vlgmr.msrb.gmra.mxu1 %vm332_vm1, %v2161_v19 }
  0xc9   : > { %v957_v25 = vpop.permute.xlu0 %956 }
  0xca   : > { %v962_v26 = vsel %vm2714_vm8, %v955_v13, %v957_v25 }
  0xcb   : > { %v864_v27 = vpop.permute.xlu1 %863  ;;  %2164 = vmatpush.msk.msrb.mxu2 %vm336_vm0, %v962_v26  ;;  %v1052_v33 = vpop.permute.xlu2 %1051 }
  0xcc   : > { %v869_v28 = vsel %vm2715_vm7, %v862_v16, %v864_v27 }
  0xcd   : > { %2157 = vmatpush.msk.msra.mxu3 %vm336_vm0, %v869_v28 }
  0xce   : > { %2158 = vmatmul.msk.f32.vlgmr.msra.gmra.mxu3 %vm332_vm1, %v2154_v17  ;;  %2165 = vmatmul.msk.f32.vlgmr.msrb.gmra.mxu2 %vm332_vm1, %v2161_v19 }
  0xd1   : > { %v959_v29 = vpop.permute.xlu0 %958 }
  0xd2   : > { %v963_v30 = vsel %vm2714_vm8, %v957_v25, %v959_v29 }
  0xd3   : > { %v866_v31 = vpop.permute.xlu1 %865  ;;  %2166 = vmatpush.msk.msrb.mxu3 %vm336_vm0, %v963_v30  ;;  %v1133_v21 = vpop.permute.xlu2 %1132 }
  0xd4   : > { %v870_v32 = vsel %vm2715_vm7, %v864_v27, %v866_v31 }
  0xd5   : > { %2159 = vmatpush.msk.msrb.mxu0 %vm336_vm0, %v870_v32 }
  0xd6   : > { %2160 = vmatmul.msk.f32.vlgmr.msrb.gmra.mxu0 %vm332_vm1, %v2154_v17  ;;  %2167 = vmatmul.msk.f32.vlgmr.msrb.gmra.mxu3 %vm332_vm1, %v2161_v19 }
  0xd9   : > { %v1046_v37 = vpop.permute.xlu0 %1045 }
  0xdb   : > { %v1050_v34 = vpop.permute.xlu1 %1049 }
  0xdc   : > { %v1056_v36 = vsel %vm2713_vm9, %v1050_v34, %v1052_v33 }
  0xdd   : > { %2173 = vmatpush.msk.msra.mxu2 %vm336_vm0, %v1056_v36 }
  0xde   : > { %2174 = vmatmul.msk.f32.vlgmr.msra.gmra.mxu2 %vm332_vm1, %v2168_v35 }
  0xe1   : > { %v1142_v25 = vpop.permute.xlu0 %1141 }
  0xe3   : > { %v1048_v38 = vpop.permute.xlu1 %1047 }
  0xe4   : > { %v1055_v39 = vsel %vm2713_vm9, %v1048_v38, %v1050_v34  ;;  %v1054_v40 = vsel %vm2713_vm9, %v1046_v37, %v1048_v38 }
  0xe5   : > { %2169 = vmatpush.msk.msra.mxu0 %vm336_vm0, %v1054_v40  ;;  %2171 = vmatpush.msk.msra.mxu1 %vm336_vm0, %v1055_v39 }
  0xe6   : > { %2170 = vmatmul.msk.f32.vlgmr.msra.gmra.mxu0 %vm332_vm1, %v2168_v35  ;;  %2172 = vmatmul.msk.f32.vlgmr.msra.gmra.mxu1 %vm332_vm1, %v2168_v35 }
 0x112   : > { %v360_v43 = vpop.f32.mrf.mxu0 }
 0x113   : > { %v436_v59 = vadd.f32 %v435_v44, %v360_v43 }
 0x114   : > { %v380_v41 = vpop.f32.mrf.mxu1 }
 0x119   : > { %v400_v42 = vpop.f32.mrf.mxu2 }
 0x11a   : > { %v455_v47 = vpop.f32.mrf.mxu0 }
 0x11b   : > { %v456_v57 = vadd.f32 %v455_v47, %v380_v41 }
 0x11c   : > { %v475_v45 = vpop.f32.mrf.mxu1 }
 0x11d   : > { %v476_v58 = vadd.f32 %v475_v45, %v400_v42 }
 0x11f   : > { %v545_v48 = vpop.f32.mrf.mxu3 }
 0x120   : > { %v569_v60 = vadd.f32 %v545_v48, %v456_v57 }
 0x121   : > { %v525_v46 = vpop.f32.mrf.mxu2 }
 0x122   : > { %v565_v51 = vpop.f32.mrf.mxu0  ;;  %v568_v0 = vadd.f32 %v525_v46, %v436_v59 }
 0x123   : > { %v570_v61 = vadd.f32 %v565_v51, %v476_v58 }
 0x127   : > { %v658_v52 = vpop.f32.mrf.mxu3 }
 0x128   : > { %v663_v4 = vadd.f32 %v658_v52, %v570_v61  ;;  %v1207_v52 = vld [vmem:[%s2711_s7] sm:$0x7] }
 0x129   : > { %v638_v50 = vpop.f32.mrf.mxu2 }
 0x12a   : > { %v662_v3 = vadd.f32 %v638_v50, %v569_v60 }
 0x12b   : > { %v618_v49 = vpop.f32.mrf.mxu1 }
 0x12c   : > { %v661_v5 = vadd.f32 %v618_v49, %v568_v0 }
 0x131   : > { %v711_v55 = vpop.f32.mrf.mxu0 }
 0x132   : > { %v754_v9 = vadd.f32 %v711_v55, %v661_v5  ;;  %v1209_v55 = vperm.slane %v1207_v52, 0 }
 0x133   : > { %v731_v53 = vpop.f32.mrf.mxu1 }
 0x134   : > { %v755_v6 = vadd.f32 %v731_v53, %v662_v3 }
 0x139   : > { %v751_v54 = vpop.f32.mrf.mxu2  ;;  %v824_v1 = vpop.f32.mrf.mxu0 }
 0x13a   : > { %v756_v7 = vadd.f32 %v751_v54, %v663_v4  ;;  %v848_v13 = vadd.f32 %v824_v1, %v755_v6 }
 0x13b   : > { %v844_v62 = vpop.f32.mrf.mxu1 }
 0x13c   : > { %v849_v14 = vadd.f32 %v844_v62, %v756_v7  ;;  %v1210_v7 = vperm.slane %v1207_v52, 1 }
 0x141   : > { %v804_v56 = vpop.f32.mrf.mxu3 }
 0x142   : > { %v847_v12 = vadd.f32 %v804_v56, %v754_v9 }
 0x143   : > { %v990_v10 = vpop.f32.mrf.mxu1 }
 0x149   : > { %v897_v63 = vpop.f32.mrf.mxu2 }
 0x14a   : > { %v940_v16 = vadd.f32 %v897_v63, %v847_v12 }
 0x14c   : > { %v1033_v22 = vadd.f32 %v990_v10, %v940_v16 }
 0x151   : > { %v917_v2 = vpop.f32.mrf.mxu3  ;;  %v1010_v8 = vpop.f32.mrf.mxu2 }
 0x152   : > { %v941_v17 = vadd.f32 %v917_v2, %v848_v13 }
 0x153   : > { %v937_v11 = vpop.f32.mrf.mxu0 }
 0x154   : > { %v942_v18 = vadd.f32 %v937_v11, %v849_v14  ;;  %v1034_v23 = vadd.f32 %v1010_v8, %v941_v17 }
 0x159   : > { %v1030_v15 = vpop.f32.mrf.mxu3 }
 0x15a   : > { %v1035_v19 = vadd.f32 %v1030_v15, %v942_v18  ;;  %v1211_v18 = vperm.slane %v1207_v52, 2 }
 0x161   : > { %v1123_v20 = vpop.f32.mrf.mxu2 }
 0x162   : > { %v1128_v24 = vadd.f32 %v1123_v20, %v1035_v19 }
 0x163   : > { %v1083_v26 = vpop.f32.mrf.mxu0  ;;  %v1103_v27 = vpop.f32.mrf.mxu1 }
 0x164   : > { %v1137_v28 = vmul.f32 %v1133_v21, %v1128_v24  ;;  %v1126_v29 = vadd.f32 %v1083_v26, %v1033_v22  ;;  %v1127_v30 = vadd.f32 %v1103_v27, %v1034_v23  ;;  %v1944_v22 = vld [vmem:[%s2709_s5] sm:$0xf] }
 0x165   : > { %v1218_v24 = vld [vmem:[%s2708_s4] sm:$0xf] }
 0x166   : > { %v1135_v31 = vmul.f32 %v1133_v21, %v1126_v29  ;;  %v1136_v32 = vmul.f32 %v1133_v21, %v1127_v30  ;;  %v2542_v33 = vadd.f32 %v1142_v25, %v1137_v28  ;;  %v1953_v21 = vld [vmem:[%s2710_s6] sm:$0xf]  ;;  %v2178_v30 = vld [vmem:[%s2708_s4 + $0x4] sm:$0xf] }
 0x168   : > { %v1144_v34 = vadd.f32 %v1142_v25, %v1135_v31  ;;  %v1145_v35 = vadd.f32 %v1142_v25, %v1136_v32  ;;  %v2177_v36 = vmul.f32 -1.442695, %v2542_v33 }
 0x16a   : > { %v2175_v37 = vmul.f32 -1.442695, %v1144_v34  ;;  %v2176_v38 = vmul.f32 -1.442695, %v1145_v35  ;;  %2266 = vpow2.f32 %v2177_v36 }
 0x16c   : > { %2268 = vpow2.f32 %v2175_v37 }
 0x16d   : > { %2270 = vpow2.f32 %v2176_v38 }
 0x170   : > { %v2267_v39 = vpop.eup %2266 }
 0x171   : > { %v1158_v40 = vadd.f32 1.0, %v2267_v39 }
 0x172   : > { %v2269_v41 = vpop.eup %2268 }
 0x173   : > { %v2271_v42 = vpop.eup %2270  ;;  %v1156_v43 = vadd.f32 1.0, %v2269_v41  ;;  %2272 = vrcp.f32 %v1158_v40  ;;  %vm1194_vm12 = vweird.f32 %v1158_v40  ;;  %v1200_v3 = vand.u32 2147483648, %v1158_v40 }
 0x174   : > { %v1157_v44 = vadd.f32 1.0, %v2271_v42  ;;  %v1198_v6 = vand.u32 2147483647, %v1158_v40 }
 0x175   : > { %2274 = vrcp.f32 %v1156_v43  ;;  %v1170_v56 = vand.u32 2147483648, %v1156_v43  ;;  %v1168_v59 = vand.u32 2147483647, %v1156_v43  ;;  %vm1164_vm13 = vweird.f32 %v1156_v43 }
 0x176   : > { %2276 = vrcp.f32 %v1157_v44  ;;  %v1185_v60 = vand.u32 2147483648, %v1157_v44  ;;  %v1183_v62 = vand.u32 2147483647, %v1157_v44  ;;  %vm1179_vm9 = vweird.f32 %v1157_v44 }
 0x177   : > { %v1171_v1 = vor.u32 1.1754944e-38, %v1170_v56  ;;  %vm1169_vm8 = vcmp.eq.f32.partialorder %v1168_v59, 8.507059e+37  ;;  %v1201_v13 = vor.u32 1.1754944e-38, %v1200_v3  ;;  %v2026_v56 = vld.sshfl [vmem:[#allocation1 + $0x8] sm:$0xff pattern:$0x75316420] }
 0x178   : > { %v1186_v5 = vor.u32 1.1754944e-38, %v1185_v60  ;;  %vm1184_vm6 = vcmp.eq.f32.partialorder %v1183_v62, 8.507059e+37  ;;  %v2226_v3 = vld [vmem:[%s2708_s4 + $0x1c] sm:$0xf] }
 0x179   : > { %v2273_v45 = vpop.eup %2272 }
 0x17a   : > { %v1190_v46 = vmul.f32 %v2273_v45, %v1158_v40  ;;  %vm1195_vm14 = vweird.f32 %v2273_v45  ;;  %v2191_v40 = vld [vmem:[%s2708_s4 + $0x8] sm:$0xf] }
 0x17b   : > { %v2275_v47 = vpop.eup %2274  ;;  %vm1196_vm5 = vmor %vm1194_vm12, %vm1195_vm14 }
 0x17c   : > { %v2277_v48 = vpop.eup %2276  ;;  %v1160_v49 = vmul.f32 %v2275_v47, %v1156_v43  ;;  %v1191_v50 = vsub.f32 1.0, %v1190_v46  ;;  %vm1165_vm10 = vweird.f32 %v2275_v47 }
 0x17d   : > { %v1175_v51 = vmul.f32 %v2277_v48, %v1157_v44  ;;  %vm1180_vm11 = vweird.f32 %v2277_v48  ;;  %vm1166_vm15 = vmor %vm1164_vm13, %vm1165_vm10  ;;  %vm1199_vm10 = vcmp.eq.f32.partialorder %v1198_v6, 8.507059e+37  ;;  %v2198_v44 = vld [vmem:[%s2708_s4 + $0xc] sm:$0xf] }
 0x17e   : > { %v1161_v53 = vsub.f32 1.0, %v1160_v49  ;;  %v1192_v54 = vmul.f32 %v2273_v45, %v1191_v50  ;;  %vm1181_vm7 = vmor %vm1179_vm9, %vm1180_vm11  ;;  %vm2725_vm9 = vcmask 703488  }
 0x17f   : > { %v1176_v57 = vsub.f32 1.0, %v1175_v51  ;;  %vm2727_vm12 = vmmov %vm2725_vm9 }
 0x180   : > { %v1162_v58 = vmul.f32 %v2275_v47, %v1161_v53  ;;  %v1193_v0 = vadd.f32 %v2273_v45, %v1192_v54  ;;  %v2212_v53 = vld [vmem:[%s2708_s4 + $0x14] sm:$0xf] }
 0x181   : > { %v1177_v61 = vmul.f32 %v2277_v48, %v1176_v57 }
 0x182   : > { %v1163_v63 = vadd.f32 %v2275_v47, %v1162_v58  ;;  %v1197_v11 = vsel %vm1196_vm5, %v2273_v45, %v1193_v0  ;;  %vm2721_vm5 = vcmask 719872  }
 0x183   : > { %v1178_v2 = vadd.f32 %v2277_v48, %v1177_v61  ;;  %v1202_v16 = vsel %vm1199_vm10, %v1201_v13, %v1197_v11  ;;  %v2219_v61 = vld [vmem:[%s2708_s4 + $0x18] sm:$0xf] }
 0x184   : > { %v1167_v4 = vsel %vm1166_vm15, %v2275_v47, %v1163_v63  ;;  %v1206_v19 = vmul.f32 %v1202_v16, %v2542_v33 }
 0x185   : > { %v1172_v8 = vsel %vm1169_vm8, %v1171_v1, %v1167_v4  ;;  %v1182_v9 = vsel %vm1181_vm7, %v2277_v48, %v1178_v2  ;;  %v2205_v48 = vld [vmem:[%s2708_s4 + $0x10] sm:$0xf]  ;;  %vm2723_vm7 = vcmask 711680   ;;  %vm2724_vm8 = vmmov %vm2721_vm5 }
 0x186   : > { %v1187_v10 = vsel %vm1184_vm6, %v1186_v5, %v1182_v9  ;;  %v1204_v12 = vmul.f32 %v1172_v8, %v1144_v34  ;;  %v1217_v20 = vmul.f32 %v1211_v18, %v1206_v19  ;;  %vm2726_vm11 = vmmov %vm2723_vm7 }
 0x187   : > { %v1205_v14 = vmul.f32 %v1187_v10, %v1145_v35  ;;  %v2027_v10 = vld.sshfl [vmem:[#allocation1 + $0x10] sm:$0xff pattern:$0x75316420] }
 0x188   : > { %v1215_v15 = vmul.f32 %v1209_v55, %v1204_v12  ;;  %v2025_v55 = vld.sshfl [vmem:[#allocation1] sm:$0xff pattern:$0x75316420] }
 0x189   : > { %v1216_v17 = vmul.f32 %v1210_v7, %v1205_v14  ;;  %v2233_v7 = vld [vmem:[%s2708_s4 + $0x20] sm:$0xf] }
 0x18a   : > { %1224 = vrot.lane.b32.xlu1 %v1215_v15, %s2298_s11  ;;  %2185 = vmatpush.msk.msrb.mxu2 %vm336_vm0, %v1215_v15 }
 0x18b   : > { %1374 = vrot.lane.b32.xlu0 %v1216_v17, %s2299_s12  ;;  %1226 = vrot.lane.b32.xlu2 %v1216_v17, %s2298_s11 }
 0x18c   : > { %2186 = vmatmul.msk.f32.vlgmr.msrb.gmra.mxu2 %vm332_vm1, %v1218_v24 }
 0x192   : > { %1228 = vrot.lane.b32.xlu1 %v1217_v20, %s2298_s11 }
 0x193   : > { %1456 = vrot.lane.b32.xlu0 %v1216_v17, %s2300_s13  ;;  %1372 = vrot.lane.b32.xlu2 %v1215_v15, %s2299_s12 }
 0x19a   : > { %1376 = vrot.lane.b32.xlu1 %v1217_v20, %s2299_s12 }
 0x19b   : > { %1538 = vrot.lane.b32.xlu0 %v1216_v17, %s2301_s14  ;;  %1454 = vrot.lane.b32.xlu2 %v1215_v15, %s2300_s13 }
 0x1a2   : > { %1458 = vrot.lane.b32.xlu1 %v1217_v20, %s2300_s13 }
 0x1a3   : > { %1620 = vrot.lane.b32.xlu0 %v1216_v17, %s2302_s15  ;;  %1536 = vrot.lane.b32.xlu2 %v1215_v15, %s2301_s14 }
 0x1aa   : > { %1540 = vrot.lane.b32.xlu1 %v1217_v20, %s2301_s14 }
 0x1ab   : > { %1702 = vrot.lane.b32.xlu0 %v1216_v17, %s2303_s16  ;;  %1618 = vrot.lane.b32.xlu2 %v1215_v15, %s2302_s15 }
 0x1b2   : > { %1622 = vrot.lane.b32.xlu1 %v1217_v20, %s2302_s15 }
 0x1b3   : > { %1784 = vrot.lane.b32.xlu0 %v1216_v17, %s2304_s17  ;;  %1700 = vrot.lane.b32.xlu2 %v1215_v15, %s2303_s16 }
 0x1ba   : > { %1704 = vrot.lane.b32.xlu1 %v1217_v20, %s2303_s16 }
 0x1bb   : > { %1866 = vrot.lane.b32.xlu0 %v1216_v17, %s2305_s18  ;;  %1782 = vrot.lane.b32.xlu2 %v1215_v15, %s2304_s17 }
 0x1c2   : > { %1786 = vrot.lane.b32.xlu1 %v1217_v20, %s2304_s17 }
 0x1c3   : > { %1956 = vperm.xlu0 %2265, %v1953_v21   ;;  %1864 = vrot.lane.b32.xlu2 %v1215_v15, %s2305_s18 }
 0x1ca   : > { %1868 = vrot.lane.b32.xlu1 %v1217_v20, %s2305_s18 }
 0x1cb   : > { %1947 = vperm.xlu2 %2264, %v1944_v22   ;;  %2028 = vrot.lane.b32.xlu0 %v2025_v55, %s2305_s18 }
 0x1d2   : > { %2030 = vrot.lane.b32.xlu1 %v2026_v56, %s2305_s18 }
 0x1d3   : > { %2032 = vrot.lane.b32.xlu2 %v2027_v10, %s2305_s18  ;;  %s2246_s18 = smul.u32 12, %s2731_s28 }
 0x1d5   : > { %s305_s15 = scalar_lea.vmem %s2712_s8, %s2246_s18 }
 0x1e5   : > { %v1227_v23 = vpop.permute.xlu2 %1226 }
 0x1ed   : > { %v1373_v25 = vpop.permute.xlu2 %1372 }
 0x1f5   : > { %v1455_v26 = vpop.permute.xlu2 %1454 }
 0x1fc   : > { %v1225_v27 = vpop.permute.xlu1 %1224 }
 0x1fd   : > { %v1375_v28 = vpop.permute.xlu0 %1374  ;;  %v1230_v29 = vsel %vm328_vm2, %v1225_v27, %v1227_v23  ;;  %v1537_v33 = vpop.permute.xlu2 %1536 }
 0x1fe   : > { %2179 = vmatpush.msk.msra.mxu3 %vm336_vm0, %v1230_v29  ;;  %v1378_v32 = vsel %vm495_vm3, %v1373_v25, %v1375_v28 }
 0x1ff   : > { %2180 = vmatmul.msk.f32.vlgmr.msra.gmra.mxu3 %vm332_vm1, %v2178_v30 }
 0x200   : > { %2187 = vmatpush.msk.msrb.mxu3 %vm336_vm0, %v1216_v17 }
 0x204   : > { %v1229_v31 = vpop.permute.xlu1 %1228 }
 0x205   : > { %v1457_v34 = vpop.permute.xlu0 %1456  ;;  %v1231_v35 = vsel %vm328_vm2, %v1227_v23, %v1229_v31  ;;  %2183 = vmatpush.msk.msrb.mxu1 %vm336_vm0, %v1229_v31  ;;  %vm2718_vm2 = vcmask 875520   ;;  %v1619_v42 = vpop.permute.xlu2 %1618 }
 0x206   : > { %2181 = vmatpush.msk.msrb.mxu0 %vm336_vm0, %v1231_v35  ;;  %2184 = vmatmul.msk.f32.vlgmr.msrb.gmra.mxu1 %vm332_vm1, %v2178_v30  ;;  %v1460_v36 = vsel %vm588_vm4, %v1455_v26, %v1457_v34 }
 0x207   : > { %2192 = vmatpush.msk.msra.mxu1 %vm336_vm0, %v1378_v32  ;;  %2182 = vmatmul.msk.f32.vlgmr.msrb.gmra.mxu0 %vm332_vm1, %v2178_v30 }
 0x208   : > { %2189 = vmatpush.msk.msra.mxu0 %vm336_vm0, %v1217_v20  ;;  %2188 = vmatmul.msk.f32.vlgmr.msrb.gmra.mxu3 %vm332_vm1, %v1218_v24 }
 0x20a   : > { %2199 = vmatpush.msk.msrb.mxu0 %vm336_vm0, %v1460_v36 }
 0x20c   : > { %v1377_v37 = vpop.permute.xlu1 %1376 }
 0x20d   : > { %v1539_v38 = vpop.permute.xlu0 %1538  ;;  %v1379_v39 = vsel %vm495_vm3, %v1375_v28, %v1377_v37  ;;  %2196 = vmatpush.msk.msra.mxu3 %vm336_vm0, %v1377_v37  ;;  %vm2719_vm3 = vcmask 867328   ;;  %v1701_v49 = vpop.permute.xlu2 %1700 }
 0x20e   : > { %v1542_v41 = vsel %vm2718_vm2, %v1537_v33, %v1539_v38  ;;  %2194 = vmatpush.msk.msra.mxu2 %vm336_vm0, %v1379_v39  ;;  %2193 = vmatmul.msk.f32.vlgmr.msra.gmra.mxu1 %vm332_vm1, %v2191_v40  ;;  %vm2722_vm6 = vmmov %vm2719_vm3 }
 0x20f   : > { %2206 = vmatpush.msk.msrb.mxu3 %vm336_vm0, %v1542_v41  ;;  %2190 = vmatmul.msk.f32.vlgmr.msra.gmra.mxu0 %vm332_vm1, %v1218_v24  ;;  %v1327_v14 = vpop.f32.mrf.mxu2 }
 0x210   : > { %2195 = vmatmul.msk.f32.vlgmr.msra.gmra.mxu2 %vm332_vm1, %v2191_v40  ;;  %2197 = vmatmul.msk.f32.vlgmr.msra.gmra.mxu3 %vm332_vm1, %v2191_v40 }
 0x214   : > { %v1459_v43 = vpop.permute.xlu1 %1458 }
 0x215   : > { %v1621_v45 = vpop.permute.xlu0 %1620  ;;  %v1461_v46 = vsel %vm588_vm4, %v1457_v34, %v1459_v43  ;;  %2203 = vmatpush.msk.msrb.mxu2 %vm336_vm0, %v1459_v43  ;;  %vm2720_vm4 = vmmov %vm2718_vm2  ;;  %v1783_v57 = vpop.permute.xlu2 %1782 }
 0x216   : > { %v1624_v47 = vsel %vm2719_vm3, %v1619_v42, %v1621_v45  ;;  %2201 = vmatpush.msk.msrb.mxu1 %vm336_vm0, %v1461_v46 }
 0x217   : > { %2213 = vmatpush.msk.msra.mxu2 %vm336_vm0, %v1624_v47  ;;  %2200 = vmatmul.msk.f32.vlgmr.msrb.gmra.mxu0 %vm332_vm1, %v2198_v44 }
 0x218   : > { %2202 = vmatmul.msk.f32.vlgmr.msrb.gmra.mxu1 %vm332_vm1, %v2198_v44  ;;  %2204 = vmatmul.msk.f32.vlgmr.msrb.gmra.mxu2 %vm332_vm1, %v2198_v44 }
 0x219   : > { %2207 = vmatmul.msk.f32.vlgmr.msrb.gmra.mxu3 %vm332_vm1, %v2205_v48 }
 0x21c   : > { %v1541_v50 = vpop.permute.xlu1 %1540 }
 0x21d   : > { %v1703_v51 = vpop.permute.xlu0 %1702  ;;  %v1543_v52 = vsel %vm2720_vm4, %v1539_v38, %v1541_v50  ;;  %2210 = vmatpush.msk.msra.mxu1 %vm336_vm0, %v1541_v50  ;;  %v1865_v0 = vpop.permute.xlu2 %1864 }
 0x21e   : > { %v1706_v54 = vsel %vm2721_vm5, %v1701_v49, %v1703_v51  ;;  %2208 = vmatpush.msk.msra.mxu0 %vm336_vm0, %v1543_v52 }
 0x21f   : > { %2220 = vmatpush.msk.msrb.mxu1 %vm336_vm0, %v1706_v54  ;;  %2209 = vmatmul.msk.f32.vlgmr.msra.gmra.mxu0 %vm332_vm1, %v2205_v48 }
 0x220   : > { %2211 = vmatmul.msk.f32.vlgmr.msra.gmra.mxu1 %vm332_vm1, %v2205_v48  ;;  %2214 = vmatmul.msk.f32.vlgmr.msra.gmra.mxu2 %vm332_vm1, %v2212_v53 }
 0x224   : > { %v1623_v58 = vpop.permute.xlu1 %1622 }
 0x225   : > { %v1785_v59 = vpop.permute.xlu0 %1784  ;;  %v1625_v60 = vsel %vm2722_vm6, %v1621_v45, %v1623_v58  ;;  %2217 = vmatpush.msk.msrb.mxu0 %vm336_vm0, %v1623_v58 }
 0x226   : > { %v1788_v62 = vsel %vm2723_vm7, %v1783_v57, %v1785_v59  ;;  %2215 = vmatpush.msk.msra.mxu3 %vm336_vm0, %v1625_v60  ;;  %v1948_v60 = vpop.permute.xlu2 %1947 }
 0x227   : > { %2227 = vmatpush.msk.msra.mxu0 %vm336_vm0, %v1788_v62  ;;  %2216 = vmatmul.msk.f32.vlgmr.msra.gmra.mxu3 %vm332_vm1, %v2212_v53 }
 0x228   : > { %2218 = vmatmul.msk.f32.vlgmr.msrb.gmra.mxu0 %vm332_vm1, %v2212_v53  ;;  %2221 = vmatmul.msk.f32.vlgmr.msrb.gmra.mxu1 %vm332_vm1, %v2219_v61 }
 0x22c   : > { %v1705_v63 = vpop.permute.xlu1 %1704 }
 0x22d   : > { %v1867_v1 = vpop.permute.xlu0 %1866  ;;  %v1707_v2 = vsel %vm2724_vm8, %v1703_v51, %v1705_v63  ;;  %2224 = vmatpush.msk.msrb.mxu3 %vm336_vm0, %v1705_v63  ;;  %vm2728_vm8 = vmmov %vm2725_vm9 }
 0x22e   : > { %v1870_v4 = vsel %vm2725_vm9, %v1865_v0, %v1867_v1  ;;  %2222 = vmatpush.msk.msrb.mxu2 %vm336_vm0, %v1707_v2 }
 0x22f   : > { %2234 = vmatpush.msk.msra.mxu3 %vm336_vm0, %v1870_v4  ;;  %2223 = vmatmul.msk.f32.vlgmr.msrb.gmra.mxu2 %vm332_vm1, %v2219_v61 }
 0x230   : > { %2225 = vmatmul.msk.f32.vlgmr.msrb.gmra.mxu3 %vm332_vm1, %v2219_v61  ;;  %2228 = vmatmul.msk.f32.vlgmr.msra.gmra.mxu0 %vm332_vm1, %v2226_v3 }
 0x234   : > { %v1787_v5 = vpop.permute.xlu1 %1786 }
 0x235   : > { %v1789_v6 = vsel %vm2726_vm11, %v1785_v59, %v1787_v5  ;;  %2231 = vmatpush.msk.msra.mxu2 %vm336_vm0, %v1787_v5  ;;  %v1957_v0 = vpop.permute.xlu0 %1956  ;;  %vm2729_vm11 = vmmov %vm2728_vm8 }
 0x236   : > { %2229 = vmatpush.msk.msra.mxu1 %vm336_vm0, %v1789_v6 }
 0x237   : > { %2230 = vmatmul.msk.f32.vlgmr.msra.gmra.mxu1 %vm332_vm1, %v2226_v3  ;;  %2232 = vmatmul.msk.f32.vlgmr.msra.gmra.mxu2 %vm332_vm1, %v2226_v3 }
 0x238   : > { %2235 = vmatmul.msk.f32.vlgmr.msra.gmra.mxu3 %vm332_vm1, %v2233_v7 }
 0x23c   : > { %v1869_v8 = vpop.permute.xlu1 %1868 }
 0x23d   : > { %v1871_v9 = vsel %vm2727_vm12, %v1867_v1, %v1869_v8  ;;  %2238 = vmatpush.msk.msrb.mxu1 %vm336_vm0, %v1869_v8  ;;  %vm2048_vm12 = vcmask 519168  }
 0x23e   : > { %2236 = vmatpush.msk.msrb.mxu0 %vm336_vm0, %v1871_v9 }
 0x23f   : > { %2237 = vmatmul.msk.f32.vlgmr.msrb.gmra.mxu0 %vm332_vm1, %v2233_v7  ;;  %2239 = vmatmul.msk.f32.vlgmr.msrb.gmra.mxu1 %vm332_vm1, %v2233_v7 }
 0x282   : > { %v1258_v11 = vpop.f32.mrf.mxu3 }
 0x283   : > { %v1298_v13 = vpop.f32.mrf.mxu1  ;;  %v1328_v27 = vadd.f32 %v1327_v14, %v1258_v11 }
 0x284   : > { %v1278_v12 = vpop.f32.mrf.mxu0 }
 0x28b   : > { %v1347_v16 = vpop.f32.mrf.mxu3  ;;  %v1406_v17 = vpop.f32.mrf.mxu1 }
 0x28c   : > { %v1367_v15 = vpop.f32.mrf.mxu0  ;;  %v1348_v30 = vadd.f32 %v1347_v16, %v1278_v12  ;;  %v1449_v34 = vadd.f32 %v1406_v17, %v1328_v27 }
 0x28d   : > { %v1368_v31 = vadd.f32 %v1367_v15, %v1298_v13 }
 0x293   : > { %v1426_v18 = vpop.f32.mrf.mxu2  ;;  %v1446_v20 = vpop.f32.mrf.mxu3 }
 0x294   : > { %v1488_v19 = vpop.f32.mrf.mxu0  ;;  %v1450_v33 = vadd.f32 %v1426_v18, %v1348_v30  ;;  %v1451_v35 = vadd.f32 %v1446_v20, %v1368_v31 }
 0x295   : > { %v1508_v21 = vpop.f32.mrf.mxu1  ;;  %v1531_v36 = vadd.f32 %v1488_v19, %v1449_v34 }
 0x296   : > { %v1532_v37 = vadd.f32 %v1508_v21, %v1450_v33  ;;  %v2033_v33 = vpop.permute.xlu2 %2032 }
 0x29b   : > { %v1528_v22 = vpop.f32.mrf.mxu2 }
 0x29c   : > { %v1590_v23 = vpop.f32.mrf.mxu0  ;;  %v1570_v24 = vpop.f32.mrf.mxu3  ;;  %v1533_v38 = vadd.f32 %v1528_v22, %v1451_v35 }
 0x29d   : > { %v1610_v25 = vpop.f32.mrf.mxu1  ;;  %v1613_v39 = vadd.f32 %v1570_v24, %v1531_v36  ;;  %v1614_v41 = vadd.f32 %v1590_v23, %v1532_v37 }
 0x29e   : > { %v1615_v46 = vadd.f32 %v1610_v25, %v1533_v38 }
 0x2a3   : > { %v1652_v26 = vpop.f32.mrf.mxu2 }
 0x2a4   : > { %v1695_v43 = vadd.f32 %v1652_v26, %v1613_v39  ;;  %v2029_v39 = vpop.permute.xlu0 %2028 }
 0x2a5   : > { %v1692_v28 = vpop.f32.mrf.mxu0  ;;  %v1734_v32 = vpop.f32.mrf.mxu1 }
 0x2a6   : > { %v1697_v48 = vadd.f32 %v1692_v28, %v1615_v46  ;;  %v1777_v50 = vadd.f32 %v1734_v32, %v1695_v43 }
 0x2aa   : > { %v1672_v29 = vpop.f32.mrf.mxu3 }
 0x2ab   : > { %v1696_v47 = vadd.f32 %v1672_v29, %v1614_v41 }
 0x2ad   : > { %v1816_v44 = vpop.f32.mrf.mxu0 }
 0x2ae   : > { %v1859_v52 = vadd.f32 %v1816_v44, %v1777_v50 }
 0x2b2   : > { %v1754_v40 = vpop.f32.mrf.mxu2 }
 0x2b3   : > { %v1774_v42 = vpop.f32.mrf.mxu3  ;;  %v1778_v49 = vadd.f32 %v1754_v40, %v1696_v47  ;;  %v2031_v40 = vpop.permute.xlu1 %2030 }
 0x2b4   : > { %v1836_v45 = vpop.f32.mrf.mxu1  ;;  %v1779_v51 = vadd.f32 %v1774_v42, %v1697_v48  ;;  %v2035_v46 = vsel %vm2728_vm8, %v2031_v40, %v2033_v33  ;;  %v2034_v50 = vsel %vm2729_vm11, %v2029_v39, %v2031_v40 }
 0x2b5   : > { %v1860_v54 = vadd.f32 %v1836_v45, %v1778_v49 }
 0x2ba   : > { %v1856_v53 = vpop.f32.mrf.mxu2 }
 0x2bb   : > { %v1861_v55 = vadd.f32 %v1856_v53, %v1779_v51  ;;  %v1898_v56 = vpop.f32.mrf.mxu3 }
 0x2bc   : > { %v1941_v57 = vadd.f32 %v1898_v56, %v1859_v52  ;;  %v1918_v58 = vpop.f32.mrf.mxu0  ;;  %v1938_v59 = vpop.f32.mrf.mxu1 }
 0x2bd   : > { %v1942_v61 = vadd.f32 %v1918_v58, %v1860_v54  ;;  %v1943_v62 = vadd.f32 %v1938_v59, %v1861_v55 }
 0x2be   : > { %v1950_v63 = vmul.f32 %v1948_v60, %v1941_v57 }
 0x2bf   : > { %v1951_v1 = vmul.f32 %v1948_v60, %v1942_v61  ;;  %v1952_v2 = vmul.f32 %v1948_v60, %v1943_v62 }
 0x2c0   : > { %v2681_v3 = vadd.f32 %v1957_v0, %v1950_v63 }
 0x2c1   : > { %v2683_v4 = vadd.f32 %v1957_v0, %v1951_v1  ;;  %v2685_v5 = vadd.f32 %v1957_v0, %v1952_v2 }
 0x2c2   : > { %v2240_v6 = vmul.f32 -1.442695, %v2681_v3 }
 0x2c3   : > { %v2241_v7 = vmul.f32 -1.442695, %v2683_v4  ;;  %v2242_v8 = vmul.f32 -1.442695, %v2685_v5 }
 0x2c4   : > { %2278 = vpow2.f32 %v2240_v6 }
 0x2c5   : > { %2280 = vpow2.f32 %v2241_v7 }
 0x2c6   : > { %2282 = vpow2.f32 %v2242_v8 }
 0x2ca   : > { %v2279_v9 = vpop.eup %2278 }
 0x2cb   : > { %v2281_v10 = vpop.eup %2280  ;;  %v1971_v11 = vadd.f32 1.0, %v2279_v9 }
 0x2cc   : > { %v2283_v12 = vpop.eup %2282  ;;  %v1972_v13 = vadd.f32 1.0, %v2281_v10 }
 0x2cd   : > { %2284 = vrcp.f32 %v1971_v11  ;;  %v1973_v14 = vadd.f32 1.0, %v2283_v12  ;;  %v1985_v21 = vand.u32 2147483648, %v1971_v11  ;;  %v1983_v22 = vand.u32 2147483647, %v1971_v11 }
 0x2ce   : > { %2286 = vrcp.f32 %v1972_v13  ;;  %v1998_v26 = vand.u32 2147483647, %v1972_v13  ;;  %v2000_v27 = vand.u32 2147483648, %v1972_v13  ;;  %vm1979_vm13 = vweird.f32 %v1971_v11 }
 0x2cf   : > { %2288 = vrcp.f32 %v1973_v14  ;;  %v1986_v31 = vor.u32 1.1754944e-38, %v1985_v21  ;;  %vm1994_vm15 = vweird.f32 %v1972_v13  ;;  %v2015_v32 = vand.u32 2147483648, %v1973_v14 }
 0x2d0   : > { %v2013_v36 = vand.u32 2147483647, %v1973_v14  ;;  %vm1984_vm3 = vcmp.eq.f32.partialorder %v1983_v22, 8.507059e+37  ;;  %vm1999_vm5 = vcmp.eq.f32.partialorder %v1998_v26, 8.507059e+37  ;;  %v2001_v38 = vor.u32 1.1754944e-38, %v2000_v27 }
 0x2d1   : > { %vm2009_vm6 = vweird.f32 %v1973_v14  ;;  %v2016_v45 = vor.u32 1.1754944e-38, %v2015_v32 }
 0x2d2   : > { %vm2014_vm9 = vcmp.eq.f32.partialorder %v2013_v36, 8.507059e+37 }
 0x2d3   : > { %v2285_v15 = vpop.eup %2284 }
 0x2d4   : > { %v2287_v16 = vpop.eup %2286  ;;  %v1975_v17 = vmul.f32 %v2285_v15, %v1971_v11  ;;  %vm1980_vm1 = vweird.f32 %v2285_v15 }
 0x2d5   : > { %v1990_v18 = vmul.f32 %v2287_v16, %v1972_v13  ;;  %v2289_v19 = vpop.eup %2288  ;;  %vm1995_vm14 = vweird.f32 %v2287_v16  ;;  %vm1981_vm10 = vmor %vm1979_vm13, %vm1980_vm1 }
 0x2d6   : > { %v1976_v20 = vsub.f32 1.0, %v1975_v17  ;;  %v2005_v24 = vmul.f32 %v2289_v19, %v1973_v14  ;;  %vm2010_vm2 = vweird.f32 %v2289_v19  ;;  %vm1996_vm4 = vmor %vm1994_vm15, %vm1995_vm14 }
 0x2d7   : > { %v1991_v23 = vsub.f32 1.0, %v1990_v18  ;;  %vm2011_vm7 = vmor %vm2009_vm6, %vm2010_vm2 }
 0x2d8   : > { %v1977_v25 = vmul.f32 %v2285_v15, %v1976_v20  ;;  %v2006_v29 = vsub.f32 1.0, %v2005_v24 }
 0x2d9   : > { %v1992_v28 = vmul.f32 %v2287_v16, %v1991_v23 }
 0x2da   : > { %v1978_v30 = vadd.f32 %v2285_v15, %v1977_v25  ;;  %v2007_v35 = vmul.f32 %v2289_v19, %v2006_v29 }
 0x2db   : > { %v1993_v34 = vadd.f32 %v2287_v16, %v1992_v28 }
 0x2dc   : > { %v1982_v37 = vsel %vm1981_vm10, %v2285_v15, %v1978_v30  ;;  %v2008_v43 = vadd.f32 %v2289_v19, %v2007_v35 }
 0x2dd   : > { %v1987_v41 = vsel %vm1984_vm3, %v1986_v31, %v1982_v37  ;;  %v1997_v42 = vsel %vm1996_vm4, %v2287_v16, %v1993_v34 }
 0x2de   : > { %v2002_v44 = vsel %vm1999_vm5, %v2001_v38, %v1997_v42  ;;  %v2019_v47 = vmul.f32 %v1987_v41, %v2681_v3  ;;  %v2012_v48 = vsel %vm2011_vm7, %v2289_v19, %v2008_v43 }
 0x2df   : > { %v2020_v49 = vmul.f32 %v2002_v44, %v2683_v4  ;;  %v2017_v51 = vsel %vm2014_vm9, %v2016_v45, %v2012_v48 }
 0x2e0   : > { %v2021_v52 = vmul.f32 %v2017_v51, %v2685_v5  ;;  %v2039_v54 = vadd.f32 %v2034_v50, %v2019_v47 }
 0x2e1   : > { %v2040_v53 = vadd.f32 %v2035_v46, %v2020_v49 }
 0x2e2   : > { %v2041_v55 = vadd.f32 %v2033_v33, %v2021_v52 }
 0x2e3   : > { %v2044_v56 = vrot.slane %v2040_v53, 4 }
 0x2e4   : > { %2049 = vst.msk [vmem:[%s305_s15 + $0x8] sm:$0xf] %vm2048_vm12, %v2041_v55 }
 0x2e5   : > { %v2045_v57 = vsel %vm336_vm0, %v2039_v54, %v2044_v56 }
 0x2e6   : > { %2047 = vst [vmem:[%s305_s15] sm:$0xff] %v2045_v57 }
 0x2e7 PF: > { %s18_s27 = sadd.s32 1, %s2296_s27  }
 0x2e8   : > { %p15_p4 = scmp.ge.s32.totalorder %s18_s27, 4  }
 0x2ea   :  { %17 = sbr.rel (!%p15_p4) target bundleno = 1 (0x1), region = 108 }

</bundles_post_ra>
